<compile_context>
chip_gen: v7x
topology: tpu7x:2x2x1
jax: 0.10.0
libtpu: 0.0.40
codegen_flags: <defaults>
</compile_context>

<pallas_src>
import functools

import jax
import jax.numpy as jnp
from jax.experimental import pallas as pl
from jax.experimental.pallas import tpu as pltpu

NEG_SLOPE = 0.01   # PyTorch nn.LeakyReLU default
BN_EPS = 1e-5      # PyTorch nn.BatchNorm2d default


def _triplet_kernel(x_ref, s1_ref, s2_ref, s3_ref,
                    w1_ref, w2_ref, w3_ref,
                    b1_ref, b2_ref, b3_ref,
                    o_ref,
                    xf1, xf2,
                    *, img_w, compute_dtype):
    """Fused (Modulator -> Conv3x3(pad=1) -> BN(eval) -> LeakyReLU) x 3, one sample.

    Channel-major, lane-dense layout:
      x_ref  : [1, Cin,  H*W]   flattened NCHW input block
      sK_ref : [1, cK,   1]     per-sample FiLM scale for layer K's input channels
      wK_ref : [9, Cout, cK]    conv weights, tap-major, BN scale pre-folded
      bK_ref : [Cout, 1]        conv bias + BN shift, pre-folded
      o_ref  : [1, Cout, H*W]   flattened NCHW output block (no transpose needed)
      xf1    : VMEM [Cin,  L]   zero-bordered flat feature map, L = 2*PADF + H*W
      xf2    : VMEM [Cout, L]   ditto, reused for layers 2 and 3
    """
    HW = o_ref.shape[2]
    L = xf1.shape[1]
    PADF = (L - HW) // 2
    W = img_w

    # Column-boundary masks (built once, reused by every tap of every layer).
    col = jax.lax.broadcasted_iota(jnp.int32, (1, HW), 1) % W
    mask_l = (col != 0).astype(jnp.float32)        # taps reading the left neighbour
    mask_r = (col != (W - 1)).astype(jnp.float32)  # taps reading the right neighbour

    def conv_bn_lrelu(xf, w_ref, b_ref):
        # 3x3 conv = 9 statically shifted lane-views of the flat feature map,
        # accumulated into one [Cout, HW] f32 tile (no im2col slab, no padded-
        # plane reshapes).  Row out-of-range is handled by the zero halo strips,
        # column out-of-range by the lane masks.
        def tap(dy, dx):
            off = (dy - 1) * W + (dx - 1)
            patch = xf[:, PADF + off:PADF + off + HW]          # [c_in, HW]
            if dx == 0:
                patch = patch * mask_l
            elif dx == 2:
                patch = patch * mask_r
            wt = w_ref[dy * 3 + dx].astype(compute_dtype)      # [Cout, c_in]
            return jnp.dot(wt, patch.astype(compute_dtype),
                           preferred_element_type=jnp.float32)

        acc = tap(1, 1)                                        # centre tap first
        for dy in range(3):
            for dx in range(3):
                if (dy, dx) != (1, 1):
                    acc = acc + tap(dy, dx)
        y = acc + b_ref[...]                          # conv bias + BN (pre-folded)
        return jnp.maximum(y, NEG_SLOPE * y)          # LeakyReLU (lane-dense epilogue)

    zpad_in = jnp.zeros((xf1.shape[0], PADF), jnp.float32)
    zpad_mid = jnp.zeros((xf2.shape[0], PADF), jnp.float32)

    # ---- block 1: FiLM fused into the interior fill; only halo strips zeroed ----
    xf1[:, 0:PADF] = zpad_in
    xf1[:, PADF + HW:PADF + HW + PADF] = zpad_in
    xf1[:, PADF:PADF + HW] = x_ref[0] * s1_ref[0]
    y = conv_bn_lrelu(xf1, w1_ref, b1_ref)

    # ---- block 2 (intermediate never leaves VMEM) ----
    xf2[:, 0:PADF] = zpad_mid
    xf2[:, PADF + HW:PADF + HW + PADF] = zpad_mid
    xf2[:, PADF:PADF + HW] = y * s2_ref[0]
    y = conv_bn_lrelu(xf2, w2_ref, b2_ref)

    # ---- block 3 (halo of xf2 is still zero; overwrite interior only) ----
    xf2[:, PADF:PADF + HW] = y * s3_ref[0]
    y = conv_bn_lrelu(xf2, w3_ref, b3_ref)

    o_ref[0] = y.astype(o_ref.dtype)                  # lane-dense (H*W lanes) store


def _fold_layer(p, c):
    """Fold Modulator (FiLM scale), eval-mode BatchNorm and conv bias into
    (per-sample scale, tap-major weight, bias) consumed by the kernel."""
    cout, cin, kh, kw = p["conv_w"].shape
    # Modulator: Linear(mod_dims -> cin) FiLM scale on the conditioning vector.
    s = (c @ p["mod_w"].T + p["mod_b"])[:, :, None]                    # [B, cin, 1]
    # BatchNorm2d (eval) folded into weight / bias.
    g = p["bn_gamma"] / jnp.sqrt(p["bn_var"] + BN_EPS)                 # [cout]
    w = jnp.transpose(p["conv_w"], (2, 3, 0, 1)).reshape(kh * kw, cout, cin)
    w = w * g[None, :, None]                                           # [9, cout, cin]
    bias = (p["conv_b"] * g + p["bn_beta"] - p["bn_mean"] * g)[:, None]  # [cout, 1]
    return s, w, bias


def convolution_triplet_modulated(x_nchw, c, params, *, compute_dtype=jnp.float32):
    """Forward pass. x_nchw: [B, Cin, H, W] (PyTorch layout), c: [B, mod_dims]."""
    assert len(params) == 3
    B, Cin, H, W = x_nchw.shape
    HW = H * W
    x_flat = x_nchw.reshape(B, Cin, HW)          # free reshape: NCHW is channel-major

    folded = [_fold_layer(p, c) for p in params]
    (s1, w1, b1), (s2, w2, b2), (s3, w3, b3) = folded
    Cout = w1.shape[1]

    PADF = 128 * ((W + 1 + 127) // 128)          # lane-aligned halo >= W+1 per side
    L = HW + 2 * PADF

    est_bytes = 4 * (2 * (Cin + Cout) * HW       # double-buffered in/out blocks
                     + (Cin + Cout) * L          # flat padded scratch
                     + 9 * (Cin + 2 * Cout) * Cout
                     + 2 * (Cin + 2 * Cout) + 6 * Cout + 4096)
    vmem_limit = int(min(max(2 * est_bytes, 32 << 20), 48 << 20))

    kernel = functools.partial(_triplet_kernel, img_w=W, compute_dtype=compute_dtype)
    out = pl.pallas_call(
        kernel,
        out_shape=jax.ShapeDtypeStruct((B, Cout, HW), jnp.float32),
        grid_spec=pltpu.PrefetchScalarGridSpec(
            num_scalar_prefetch=0,
            grid=(B,),                           # one batch element per grid step
            in_specs=[
                pl.BlockSpec((1, Cin, HW), lambda b: (b, 0, 0)),
                pl.BlockSpec((1, Cin, 1), lambda b: (b, 0, 0)),
                pl.BlockSpec((1, Cout, 1), lambda b: (b, 0, 0)),
                pl.BlockSpec((1, Cout, 1), lambda b: (b, 0, 0)),
                pl.BlockSpec((9, Cout, Cin), lambda b: (0, 0, 0)),
                pl.BlockSpec((9, Cout, Cout), lambda b: (0, 0, 0)),
                pl.BlockSpec((9, Cout, Cout), lambda b: (0, 0, 0)),
                pl.BlockSpec((Cout, 1), lambda b: (0, 0)),
                pl.BlockSpec((Cout, 1), lambda b: (0, 0)),
                pl.BlockSpec((Cout, 1), lambda b: (0, 0)),
            ],
            out_specs=pl.BlockSpec((1, Cout, HW), lambda b: (b, 0, 0)),
            scratch_shapes=[
                pltpu.VMEM((Cin, L), jnp.float32),
                pltpu.VMEM((Cout, L), jnp.float32),
            ],
        ),
        compiler_params=pltpu.CompilerParams(
            dimension_semantics=("parallel",),
            vmem_limit_bytes=vmem_limit),
    )(x_flat, s1, s2, s3, w1, w2, w3, b1, b2, b3)

    return out.reshape(B, Cout, H, W)            # free reshape: already NCHW order


def _reference_forward(x, c, params):
    """Pure-JAX/XLA reference of the PyTorch forward (sanity check only)."""
    for p in params:
        s = c @ p["mod_w"].T + p["mod_b"]
        x = x * s[:, :, None, None]                          # Modulator (FiLM scale)
        x = jax.lax.conv_general_dilated(
            x, p["conv_w"], window_strides=(1, 1), padding="SAME",
            dimension_numbers=("NCHW", "OIHW", "NCHW"),
            precision=jax.lax.Precision.HIGHEST)
        x = x + p["conv_b"][None, :, None, None]
        g = p["bn_gamma"] / jnp.sqrt(p["bn_var"] + BN_EPS)
        x = (x - p["bn_mean"][None, :, None, None]) * g[None, :, None, None] \
            + p["bn_beta"][None, :, None, None]
        x = jnp.where(x >= 0.0, x, NEG_SLOPE * x)            # LeakyReLU
    return x


def init_params(key, in_channels, layer_channels, mod_dims, kernel_size=3):
    """Deterministic synthetic parameters mirroring the PyTorch module shapes."""
    params = []
    cin = in_channels
    for blk in range(3):
        ks = jax.random.split(jax.random.fold_in(key, blk), 8)
        cout = layer_channels
        mod_w = 0.2 * jax.random.normal(ks[0], (cin, mod_dims), jnp.float32)
        mod_b = 1.0 + 0.1 * jax.random.normal(ks[1], (cin,), jnp.float32)
        conv_w = 0.1 * jax.random.normal(
            ks[2], (cout, cin, kernel_size, kernel_size), jnp.float32)
        conv_b = 0.05 * jax.random.normal(ks[3], (cout,), jnp.float32)
        bn_gamma = 1.0 + 0.1 * jax.random.normal(ks[4], (cout,), jnp.float32)
        bn_beta = 0.1 * jax.random.normal(ks[5], (cout,), jnp.float32)
        bn_mean = 0.1 * jax.random.normal(ks[6], (cout,), jnp.float32)
        bn_var = 1.0 + 0.1 * jax.nn.softplus(
            jax.random.normal(ks[7], (cout,), jnp.float32))
        params.append(dict(mod_w=mod_w, mod_b=mod_b, conv_w=conv_w, conv_b=conv_b,
                           bn_gamma=bn_gamma, bn_beta=bn_beta,
                           bn_mean=bn_mean, bn_var=bn_var))
        cin = cout
    return params


if __name__ == "__main__":
    B, IN_CH, LAYER_CH, MOD_DIMS, H, W = 2, 4, 8, 6, 16, 16

    key = jax.random.PRNGKey(0)
    kx, kc, kp = jax.random.split(key, 3)
    x = jax.random.normal(kx, (B, IN_CH, H, W), jnp.float32)   # NCHW like PyTorch
    c = jax.random.normal(kc, (B, MOD_DIMS), jnp.float32)
    params = init_params(kp, IN_CH, LAYER_CH, MOD_DIMS)

    fwd = jax.jit(functools.partial(convolution_triplet_modulated, params=params))
    out = fwd(x, c)
    jax.block_until_ready(out)
    assert out.shape == (B, LAYER_CH, H, W), out.shape

    ref = _reference_forward(x, c, params)
    err = float(jnp.max(jnp.abs(out - ref)))
    assert err < 2e-3, f"max abs error vs reference: {err}"

    print("KERNEL_OK")
</pallas_src>

<mosaic_0001>
module attributes {stable_mosaic.version = 11 : i64} {
  func.func @_triplet_kernel(%arg0: i32, %arg1: memref<1x4x256xf32, #tpu.memory_space<vmem>>, %arg2: memref<1x4x1xf32, #tpu.memory_space<vmem>>, %arg3: memref<1x8x1xf32, #tpu.memory_space<vmem>>, %arg4: memref<1x8x1xf32, #tpu.memory_space<vmem>>, %arg5: memref<9x8x4xf32, #tpu.memory_space<vmem>>, %arg6: memref<9x8x8xf32, #tpu.memory_space<vmem>>, %arg7: memref<9x8x8xf32, #tpu.memory_space<vmem>>, %arg8: memref<8x1xf32, #tpu.memory_space<vmem>>, %arg9: memref<8x1xf32, #tpu.memory_space<vmem>>, %arg10: memref<8x1xf32, #tpu.memory_space<vmem>>, %arg11: memref<1x8x256xf32, #tpu.memory_space<vmem>>, %arg12: memref<4x512xf32, #tpu.memory_space<vmem>>, %arg13: memref<8x512xf32, #tpu.memory_space<vmem>>) attributes {dimension_semantics = [#tpu.dimension_semantics<parallel>], iteration_bounds = array<i64: 2>, scalar_prefetch = 0 : i64, scratch_operands = 2 : i64, tpu.core_type = #tpu.core_type<tc>, window_params = [{transform_indices = @transform_0, window_bounds = array<i64: 1, 4, 256>}, {transform_indices = @transform_1, window_bounds = array<i64: 1, 4, 1>}, {transform_indices = @transform_2, window_bounds = array<i64: 1, 8, 1>}, {transform_indices = @transform_3, window_bounds = array<i64: 1, 8, 1>}, {pipeline_mode = #tpu.pipeline_mode<synchronous>, transform_indices = @transform_4, window_bounds = array<i64: 9, 8, 4>}, {pipeline_mode = #tpu.pipeline_mode<synchronous>, transform_indices = @transform_5, window_bounds = array<i64: 9, 8, 8>}, {pipeline_mode = #tpu.pipeline_mode<synchronous>, transform_indices = @transform_6, window_bounds = array<i64: 9, 8, 8>}, {pipeline_mode = #tpu.pipeline_mode<synchronous>, transform_indices = @transform_7, window_bounds = array<i64: 8, 1>}, {pipeline_mode = #tpu.pipeline_mode<synchronous>, transform_indices = @transform_8, window_bounds = array<i64: 8, 1>}, {pipeline_mode = #tpu.pipeline_mode<synchronous>, transform_indices = @transform_9, window_bounds = array<i64: 8, 1>}, {transform_indices = @transform_10, window_bounds = array<i64: 1, 8, 256>}]} {
    %0 = tpu.iota {dimensions = array<i32: 1>} : vector<1x256xi32>
    %c16_i32 = arith.constant 16 : i32
    %c0_i32 = arith.constant 0 : i32
    %1 = arith.cmpi eq, %c16_i32, %c0_i32 : i32
    %c1_i32 = arith.constant 1 : i32
    %2 = arith.select %1, %c1_i32, %c16_i32 : i32
    %3 = vector.broadcast %2 : i32 to vector<1x256xi32>
    %4 = arith.remsi %0, %3 : vector<1x256xi32>
    %c0_i32_0 = arith.constant 0 : i32
    %5 = vector.broadcast %c0_i32_0 : i32 to vector<1x256xi32>
    %6 = arith.cmpi ne, %4, %5 : vector<1x256xi32>
    %c0_i32_1 = arith.constant 0 : i32
    %7 = vector.broadcast %c0_i32_1 : i32 to vector<1x256xi32>
    %8 = arith.cmpi slt, %4, %7 : vector<1x256xi32>
    %c0_i32_2 = arith.constant 0 : i32
    %9 = arith.cmpi slt, %2, %c0_i32_2 : i32
    %10 = vector.broadcast %9 : i1 to vector<1x256xi1>
    %11 = vector.broadcast %10 : vector<1x256xi1> to vector<1x256xi1>
    %12 = arith.xori %8, %11 : vector<1x256xi1>
    %13 = arith.andi %12, %6 : vector<1x256xi1>
    %14 = vector.broadcast %2 : i32 to vector<1x256xi32>
    %15 = arith.addi %4, %14 : vector<1x256xi32>
    %16 = arith.select %13, %15, %4 : vector<1x256xi1>, vector<1x256xi32>
    %c0_i32_3 = arith.constant 0 : i32
    %17 = vector.broadcast %c0_i32_3 : i32 to vector<1x256xi32>
    %18 = arith.cmpi ne, %16, %17 : vector<1x256xi32>
    %19 = arith.extui %18 : vector<1x256xi1> to vector<1x256xi32>
    %20 = arith.sitofp %19 : vector<1x256xi32> to vector<1x256xf32>
    %c15_i32 = arith.constant 15 : i32
    %21 = vector.broadcast %c15_i32 : i32 to vector<1x256xi32>
    %22 = arith.cmpi ne, %16, %21 : vector<1x256xi32>
    %23 = arith.extui %22 : vector<1x256xi1> to vector<1x256xi32>
    %24 = arith.sitofp %23 : vector<1x256xi32> to vector<1x256xf32>
    %cst = arith.constant 0.000000e+00 : f32
    %25 = vector.broadcast %cst : f32 to vector<4x128xf32>
    %cst_4 = arith.constant 0.000000e+00 : f32
    %26 = vector.broadcast %cst_4 : f32 to vector<8x128xf32>
    %c0 = arith.constant 0 : index
    %c0_5 = arith.constant 0 : index
    %27 = vector.load %arg12[%c0, %c0_5] : memref<4x512xf32, #tpu.memory_space<vmem>>, vector<4x128xf32>
    tpu.vector_store %arg12[%c0, %c0_5], %25 {strides = array<i32>} : memref<4x512xf32, #tpu.memory_space<vmem>>, vector<4x128xf32>,
    %c0_6 = arith.constant 0 : index
    %c384 = arith.constant 384 : index
    %28 = vector.load %arg12[%c0_6, %c384] : memref<4x512xf32, #tpu.memory_space<vmem>>, vector<4x128xf32>
    tpu.vector_store %arg12[%c0_6, %c384], %25 {strides = array<i32>} : memref<4x512xf32, #tpu.memory_space<vmem>>, vector<4x128xf32>,
    %c0_7 = arith.constant 0 : index
    %c0_8 = arith.constant 0 : index
    %c0_9 = arith.constant 0 : index
    %29 = vector.load %arg1[%c0_7, %c0_8, %c0_9] : memref<1x4x256xf32, #tpu.memory_space<vmem>>, vector<1x4x256xf32>
    %30 = vector.shape_cast %29 : vector<1x4x256xf32> to vector<4x256xf32>
    %c0_10 = arith.constant 0 : index
    %c0_11 = arith.constant 0 : index
    %c0_12 = arith.constant 0 : index
    %31 = vector.load %arg2[%c0_10, %c0_11, %c0_12] : memref<1x4x1xf32, #tpu.memory_space<vmem>>, vector<1x4x1xf32>
    %32 = vector.shape_cast %31 : vector<1x4x1xf32> to vector<4x1xf32>
    %33 = vector.broadcast %32 : vector<4x1xf32> to vector<4x256xf32>
    %34 = arith.mulf %30, %33 : vector<4x256xf32>
    %c0_13 = arith.constant 0 : index
    %c128 = arith.constant 128 : index
    %35 = vector.load %arg12[%c0_13, %c128] : memref<4x512xf32, #tpu.memory_space<vmem>>, vector<4x256xf32>
    tpu.vector_store %arg12[%c0_13, %c128], %34 {strides = array<i32>} : memref<4x512xf32, #tpu.memory_space<vmem>>, vector<4x256xf32>,
    %c0_14 = arith.constant 0 : index
    %c128_15 = arith.constant 128 : index
    %36 = vector.load %arg12[%c0_14, %c128_15] : memref<4x512xf32, #tpu.memory_space<vmem>>, vector<4x256xf32>
    %c4 = arith.constant 4 : index
    %c0_16 = arith.constant 0 : index
    %c0_17 = arith.constant 0 : index
    %37 = vector.load %arg5[%c4, %c0_16, %c0_17] : memref<9x8x4xf32, #tpu.memory_space<vmem>>, vector<1x8x4xf32>
    %38 = vector.shape_cast %37 : vector<1x8x4xf32> to vector<8x4xf32>
    %cst_18 = arith.constant dense<0.000000e+00> : vector<8x256xf32>
    %39 = tpu.matmul %38, %36, %cst_18 {dimension_numbers = #tpu.dot_dimension_numbers<[1], [0], [0], [1], [0, 0, 1, 1], [], []>} : vector<8x4xf32>, vector<4x256xf32>, vector<8x256xf32> -> vector<8x256xf32>
    %c0_19 = arith.constant 0 : index
    %c111 = arith.constant 111 : index
    %40 = vector.load %arg12[%c0_19, %c111] : memref<4x512xf32, #tpu.memory_space<vmem>>, vector<4x256xf32>
    %41 = vector.broadcast %20 : vector<1x256xf32> to vector<4x256xf32>
    %42 = arith.mulf %40, %41 : vector<4x256xf32>
    %c0_20 = arith.constant 0 : index
    %c0_21 = arith.constant 0 : index
    %c0_22 = arith.constant 0 : index
    %43 = vector.load %arg5[%c0_20, %c0_21, %c0_22] : memref<9x8x4xf32, #tpu.memory_space<vmem>>, vector<1x8x4xf32>
    %44 = vector.shape_cast %43 : vector<1x8x4xf32> to vector<8x4xf32>
    %cst_23 = arith.constant dense<0.000000e+00> : vector<8x256xf32>
    %45 = tpu.matmul %44, %42, %cst_23 {dimension_numbers = #tpu.dot_dimension_numbers<[1], [0], [0], [1], [0, 0, 1, 1], [], []>} : vector<8x4xf32>, vector<4x256xf32>, vector<8x256xf32> -> vector<8x256xf32>
    %46 = arith.addf %39, %45 : vector<8x256xf32>
    %c0_24 = arith.constant 0 : index
    %c112 = arith.constant 112 : index
    %47 = vector.load %arg12[%c0_24, %c112] : memref<4x512xf32, #tpu.memory_space<vmem>>, vector<4x256xf32>
    %c1 = arith.constant 1 : index
    %c0_25 = arith.constant 0 : index
    %c0_26 = arith.constant 0 : index
    %48 = vector.load %arg5[%c1, %c0_25, %c0_26] : memref<9x8x4xf32, #tpu.memory_space<vmem>>, vector<1x8x4xf32>
    %49 = vector.shape_cast %48 : vector<1x8x4xf32> to vector<8x4xf32>
    %cst_27 = arith.constant dense<0.000000e+00> : vector<8x256xf32>
    %50 = tpu.matmul %49, %47, %cst_27 {dimension_numbers = #tpu.dot_dimension_numbers<[1], [0], [0], [1], [0, 0, 1, 1], [], []>} : vector<8x4xf32>, vector<4x256xf32>, vector<8x256xf32> -> vector<8x256xf32>
    %51 = arith.addf %46, %50 : vector<8x256xf32>
    %c0_28 = arith.constant 0 : index
    %c113 = arith.constant 113 : index
    %52 = vector.load %arg12[%c0_28, %c113] : memref<4x512xf32, #tpu.memory_space<vmem>>, vector<4x256xf32>
    %53 = vector.broadcast %24 : vector<1x256xf32> to vector<4x256xf32>
    %54 = arith.mulf %52, %53 : vector<4x256xf32>
    %c2 = arith.constant 2 : index
    %c0_29 = arith.constant 0 : index
    %c0_30 = arith.constant 0 : index
    %55 = vector.load %arg5[%c2, %c0_29, %c0_30] : memref<9x8x4xf32, #tpu.memory_space<vmem>>, vector<1x8x4xf32>
    %56 = vector.shape_cast %55 : vector<1x8x4xf32> to vector<8x4xf32>
    %cst_31 = arith.constant dense<0.000000e+00> : vector<8x256xf32>
    %57 = tpu.matmul %56, %54, %cst_31 {dimension_numbers = #tpu.dot_dimension_numbers<[1], [0], [0], [1], [0, 0, 1, 1], [], []>} : vector<8x4xf32>, vector<4x256xf32>, vector<8x256xf32> -> vector<8x256xf32>
    %58 = arith.addf %51, %57 : vector<8x256xf32>
    %c0_32 = arith.constant 0 : index
    %c127 = arith.constant 127 : index
    %59 = vector.load %arg12[%c0_32, %c127] : memref<4x512xf32, #tpu.memory_space<vmem>>, vector<4x256xf32>
    %60 = vector.broadcast %20 : vector<1x256xf32> to vector<4x256xf32>
    %61 = arith.mulf %59, %60 : vector<4x256xf32>
    %c3 = arith.constant 3 : index
    %c0_33 = arith.constant 0 : index
    %c0_34 = arith.constant 0 : index
    %62 = vector.load %arg5[%c3, %c0_33, %c0_34] : memref<9x8x4xf32, #tpu.memory_space<vmem>>, vector<1x8x4xf32>
    %63 = vector.shape_cast %62 : vector<1x8x4xf32> to vector<8x4xf32>
    %cst_35 = arith.constant dense<0.000000e+00> : vector<8x256xf32>
    %64 = tpu.matmul %63, %61, %cst_35 {dimension_numbers = #tpu.dot_dimension_numbers<[1], [0], [0], [1], [0, 0, 1, 1], [], []>} : vector<8x4xf32>, vector<4x256xf32>, vector<8x256xf32> -> vector<8x256xf32>
    %65 = arith.addf %58, %64 : vector<8x256xf32>
    %c0_36 = arith.constant 0 : index
    %c129 = arith.constant 129 : index
    %66 = vector.load %arg12[%c0_36, %c129] : memref<4x512xf32, #tpu.memory_space<vmem>>, vector<4x256xf32>
    %67 = vector.broadcast %24 : vector<1x256xf32> to vector<4x256xf32>
    %68 = arith.mulf %66, %67 : vector<4x256xf32>
    %c5 = arith.constant 5 : index
    %c0_37 = arith.constant 0 : index
    %c0_38 = arith.constant 0 : index
    %69 = vector.load %arg5[%c5, %c0_37, %c0_38] : memref<9x8x4xf32, #tpu.memory_space<vmem>>, vector<1x8x4xf32>
    %70 = vector.shape_cast %69 : vector<1x8x4xf32> to vector<8x4xf32>
    %cst_39 = arith.constant dense<0.000000e+00> : vector<8x256xf32>
    %71 = tpu.matmul %70, %68, %cst_39 {dimension_numbers = #tpu.dot_dimension_numbers<[1], [0], [0], [1], [0, 0, 1, 1], [], []>} : vector<8x4xf32>, vector<4x256xf32>, vector<8x256xf32> -> vector<8x256xf32>
    %72 = arith.addf %65, %71 : vector<8x256xf32>
    %c0_40 = arith.constant 0 : index
    %c143 = arith.constant 143 : index
    %73 = vector.load %arg12[%c0_40, %c143] : memref<4x512xf32, #tpu.memory_space<vmem>>, vector<4x256xf32>
    %74 = vector.broadcast %20 : vector<1x256xf32> to vector<4x256xf32>
    %75 = arith.mulf %73, %74 : vector<4x256xf32>
    %c6 = arith.constant 6 : index
    %c0_41 = arith.constant 0 : index
    %c0_42 = arith.constant 0 : index
    %76 = vector.load %arg5[%c6, %c0_41, %c0_42] : memref<9x8x4xf32, #tpu.memory_space<vmem>>, vector<1x8x4xf32>
    %77 = vector.shape_cast %76 : vector<1x8x4xf32> to vector<8x4xf32>
    %cst_43 = arith.constant dense<0.000000e+00> : vector<8x256xf32>
    %78 = tpu.matmul %77, %75, %cst_43 {dimension_numbers = #tpu.dot_dimension_numbers<[1], [0], [0], [1], [0, 0, 1, 1], [], []>} : vector<8x4xf32>, vector<4x256xf32>, vector<8x256xf32> -> vector<8x256xf32>
    %79 = arith.addf %72, %78 : vector<8x256xf32>
    %c0_44 = arith.constant 0 : index
    %c144 = arith.constant 144 : index
    %80 = vector.load %arg12[%c0_44, %c144] : memref<4x512xf32, #tpu.memory_space<vmem>>, vector<4x256xf32>
    %c7 = arith.constant 7 : index
    %c0_45 = arith.constant 0 : index
    %c0_46 = arith.constant 0 : index
    %81 = vector.load %arg5[%c7, %c0_45, %c0_46] : memref<9x8x4xf32, #tpu.memory_space<vmem>>, vector<1x8x4xf32>
    %82 = vector.shape_cast %81 : vector<1x8x4xf32> to vector<8x4xf32>
    %cst_47 = arith.constant dense<0.000000e+00> : vector<8x256xf32>
    %83 = tpu.matmul %82, %80, %cst_47 {dimension_numbers = #tpu.dot_dimension_numbers<[1], [0], [0], [1], [0, 0, 1, 1], [], []>} : vector<8x4xf32>, vector<4x256xf32>, vector<8x256xf32> -> vector<8x256xf32>
    %84 = arith.addf %79, %83 : vector<8x256xf32>
    %c0_48 = arith.constant 0 : index
    %c145 = arith.constant 145 : index
    %85 = vector.load %arg12[%c0_48, %c145] : memref<4x512xf32, #tpu.memory_space<vmem>>, vector<4x256xf32>
    %86 = vector.broadcast %24 : vector<1x256xf32> to vector<4x256xf32>
    %87 = arith.mulf %85, %86 : vector<4x256xf32>
    %c8 = arith.constant 8 : index
    %c0_49 = arith.constant 0 : index
    %c0_50 = arith.constant 0 : index
    %88 = vector.load %arg5[%c8, %c0_49, %c0_50] : memref<9x8x4xf32, #tpu.memory_space<vmem>>, vector<1x8x4xf32>
    %89 = vector.shape_cast %88 : vector<1x8x4xf32> to vector<8x4xf32>
    %cst_51 = arith.constant dense<0.000000e+00> : vector<8x256xf32>
    %90 = tpu.matmul %89, %87, %cst_51 {dimension_numbers = #tpu.dot_dimension_numbers<[1], [0], [0], [1], [0, 0, 1, 1], [], []>} : vector<8x4xf32>, vector<4x256xf32>, vector<8x256xf32> -> vector<8x256xf32>
    %91 = arith.addf %84, %90 : vector<8x256xf32>
    %c0_52 = arith.constant 0 : index
    %c0_53 = arith.constant 0 : index
    %92 = vector.load %arg8[%c0_52, %c0_53] : memref<8x1xf32, #tpu.memory_space<vmem>>, vector<8x1xf32>
    %93 = vector.broadcast %92 : vector<8x1xf32> to vector<8x256xf32>
    %94 = arith.addf %91, %93 : vector<8x256xf32>
    %cst_54 = arith.constant 0.00999999977 : f32
    %95 = vector.broadcast %cst_54 : f32 to vector<8x256xf32>
    %96 = arith.mulf %95, %94 : vector<8x256xf32>
    %97 = arith.maximumf %94, %96 : vector<8x256xf32>
    %c0_55 = arith.constant 0 : index
    %c0_56 = arith.constant 0 : index
    %98 = vector.load %arg13[%c0_55, %c0_56] : memref<8x512xf32, #tpu.memory_space<vmem>>, vector<8x128xf32>
    tpu.vector_store %arg13[%c0_55, %c0_56], %26 {strides = array<i32>} : memref<8x512xf32, #tpu.memory_space<vmem>>, vector<8x128xf32>,
    %c0_57 = arith.constant 0 : index
    %c384_58 = arith.constant 384 : index
    %99 = vector.load %arg13[%c0_57, %c384_58] : memref<8x512xf32, #tpu.memory_space<vmem>>, vector<8x128xf32>
    tpu.vector_store %arg13[%c0_57, %c384_58], %26 {strides = array<i32>} : memref<8x512xf32, #tpu.memory_space<vmem>>, vector<8x128xf32>,
    %c0_59 = arith.constant 0 : index
    %c0_60 = arith.constant 0 : index
    %c0_61 = arith.constant 0 : index
    %100 = vector.load %arg3[%c0_59, %c0_60, %c0_61] : memref<1x8x1xf32, #tpu.memory_space<vmem>>, vector<1x8x1xf32>
    %101 = vector.shape_cast %100 : vector<1x8x1xf32> to vector<8x1xf32>
    %102 = vector.broadcast %101 : vector<8x1xf32> to vector<8x256xf32>
    %103 = arith.mulf %97, %102 : vector<8x256xf32>
    %c0_62 = arith.constant 0 : index
    %c128_63 = arith.constant 128 : index
    %104 = vector.load %arg13[%c0_62, %c128_63] : memref<8x512xf32, #tpu.memory_space<vmem>>, vector<8x256xf32>
    tpu.vector_store %arg13[%c0_62, %c128_63], %103 {strides = array<i32>} : memref<8x512xf32, #tpu.memory_space<vmem>>, vector<8x256xf32>,
    %c0_64 = arith.constant 0 : index
    %c128_65 = arith.constant 128 : index
    %105 = vector.load %arg13[%c0_64, %c128_65] : memref<8x512xf32, #tpu.memory_space<vmem>>, vector<8x256xf32>
    %c4_66 = arith.constant 4 : index
    %c0_67 = arith.constant 0 : index
    %c0_68 = arith.constant 0 : index
    %106 = vector.load %arg6[%c4_66, %c0_67, %c0_68] : memref<9x8x8xf32, #tpu.memory_space<vmem>>, vector<1x8x8xf32>
    %107 = vector.shape_cast %106 : vector<1x8x8xf32> to vector<8x8xf32>
    %cst_69 = arith.constant dense<0.000000e+00> : vector<8x256xf32>
    %108 = tpu.matmul %107, %105, %cst_69 {dimension_numbers = #tpu.dot_dimension_numbers<[1], [0], [0], [1], [0, 0, 1, 1], [], []>} : vector<8x8xf32>, vector<8x256xf32>, vector<8x256xf32> -> vector<8x256xf32>
    %c0_70 = arith.constant 0 : index
    %c111_71 = arith.constant 111 : index
    %109 = vector.load %arg13[%c0_70, %c111_71] : memref<8x512xf32, #tpu.memory_space<vmem>>, vector<8x256xf32>
    %110 = vector.broadcast %20 : vector<1x256xf32> to vector<8x256xf32>
    %111 = arith.mulf %109, %110 : vector<8x256xf32>
    %c0_72 = arith.constant 0 : index
    %c0_73 = arith.constant 0 : index
    %c0_74 = arith.constant 0 : index
    %112 = vector.load %arg6[%c0_72, %c0_73, %c0_74] : memref<9x8x8xf32, #tpu.memory_space<vmem>>, vector<1x8x8xf32>
    %113 = vector.shape_cast %112 : vector<1x8x8xf32> to vector<8x8xf32>
    %cst_75 = arith.constant dense<0.000000e+00> : vector<8x256xf32>
    %114 = tpu.matmul %113, %111, %cst_75 {dimension_numbers = #tpu.dot_dimension_numbers<[1], [0], [0], [1], [0, 0, 1, 1], [], []>} : vector<8x8xf32>, vector<8x256xf32>, vector<8x256xf32> -> vector<8x256xf32>
    %115 = arith.addf %108, %114 : vector<8x256xf32>
    %c0_76 = arith.constant 0 : index
    %c112_77 = arith.constant 112 : index
    %116 = vector.load %arg13[%c0_76, %c112_77] : memref<8x512xf32, #tpu.memory_space<vmem>>, vector<8x256xf32>
    %c1_78 = arith.constant 1 : index
    %c0_79 = arith.constant 0 : index
    %c0_80 = arith.constant 0 : index
    %117 = vector.load %arg6[%c1_78, %c0_79, %c0_80] : memref<9x8x8xf32, #tpu.memory_space<vmem>>, vector<1x8x8xf32>
    %118 = vector.shape_cast %117 : vector<1x8x8xf32> to vector<8x8xf32>
    %cst_81 = arith.constant dense<0.000000e+00> : vector<8x256xf32>
    %119 = tpu.matmul %118, %116, %cst_81 {dimension_numbers = #tpu.dot_dimension_numbers<[1], [0], [0], [1], [0, 0, 1, 1], [], []>} : vector<8x8xf32>, vector<8x256xf32>, vector<8x256xf32> -> vector<8x256xf32>
    %120 = arith.addf %115, %119 : vector<8x256xf32>
    %c0_82 = arith.constant 0 : index
    %c113_83 = arith.constant 113 : index
    %121 = vector.load %arg13[%c0_82, %c113_83] : memref<8x512xf32, #tpu.memory_space<vmem>>, vector<8x256xf32>
    %122 = vector.broadcast %24 : vector<1x256xf32> to vector<8x256xf32>
    %123 = arith.mulf %121, %122 : vector<8x256xf32>
    %c2_84 = arith.constant 2 : index
    %c0_85 = arith.constant 0 : index
    %c0_86 = arith.constant 0 : index
    %124 = vector.load %arg6[%c2_84, %c0_85, %c0_86] : memref<9x8x8xf32, #tpu.memory_space<vmem>>, vector<1x8x8xf32>
    %125 = vector.shape_cast %124 : vector<1x8x8xf32> to vector<8x8xf32>
    %cst_87 = arith.constant dense<0.000000e+00> : vector<8x256xf32>
    %126 = tpu.matmul %125, %123, %cst_87 {dimension_numbers = #tpu.dot_dimension_numbers<[1], [0], [0], [1], [0, 0, 1, 1], [], []>} : vector<8x8xf32>, vector<8x256xf32>, vector<8x256xf32> -> vector<8x256xf32>
    %127 = arith.addf %120, %126 : vector<8x256xf32>
    %c0_88 = arith.constant 0 : index
    %c127_89 = arith.constant 127 : index
    %128 = vector.load %arg13[%c0_88, %c127_89] : memref<8x512xf32, #tpu.memory_space<vmem>>, vector<8x256xf32>
    %129 = vector.broadcast %20 : vector<1x256xf32> to vector<8x256xf32>
    %130 = arith.mulf %128, %129 : vector<8x256xf32>
    %c3_90 = arith.constant 3 : index
    %c0_91 = arith.constant 0 : index
    %c0_92 = arith.constant 0 : index
    %131 = vector.load %arg6[%c3_90, %c0_91, %c0_92] : memref<9x8x8xf32, #tpu.memory_space<vmem>>, vector<1x8x8xf32>
    %132 = vector.shape_cast %131 : vector<1x8x8xf32> to vector<8x8xf32>
    %cst_93 = arith.constant dense<0.000000e+00> : vector<8x256xf32>
    %133 = tpu.matmul %132, %130, %cst_93 {dimension_numbers = #tpu.dot_dimension_numbers<[1], [0], [0], [1], [0, 0, 1, 1], [], []>} : vector<8x8xf32>, vector<8x256xf32>, vector<8x256xf32> -> vector<8x256xf32>
    %134 = arith.addf %127, %133 : vector<8x256xf32>
    %c0_94 = arith.constant 0 : index
    %c129_95 = arith.constant 129 : index
    %135 = vector.load %arg13[%c0_94, %c129_95] : memref<8x512xf32, #tpu.memory_space<vmem>>, vector<8x256xf32>
    %136 = vector.broadcast %24 : vector<1x256xf32> to vector<8x256xf32>
    %137 = arith.mulf %135, %136 : vector<8x256xf32>
    %c5_96 = arith.constant 5 : index
    %c0_97 = arith.constant 0 : index
    %c0_98 = arith.constant 0 : index
    %138 = vector.load %arg6[%c5_96, %c0_97, %c0_98] : memref<9x8x8xf32, #tpu.memory_space<vmem>>, vector<1x8x8xf32>
    %139 = vector.shape_cast %138 : vector<1x8x8xf32> to vector<8x8xf32>
    %cst_99 = arith.constant dense<0.000000e+00> : vector<8x256xf32>
    %140 = tpu.matmul %139, %137, %cst_99 {dimension_numbers = #tpu.dot_dimension_numbers<[1], [0], [0], [1], [0, 0, 1, 1], [], []>} : vector<8x8xf32>, vector<8x256xf32>, vector<8x256xf32> -> vector<8x256xf32>
    %141 = arith.addf %134, %140 : vector<8x256xf32>
    %c0_100 = arith.constant 0 : index
    %c143_101 = arith.constant 143 : index
    %142 = vector.load %arg13[%c0_100, %c143_101] : memref<8x512xf32, #tpu.memory_space<vmem>>, vector<8x256xf32>
    %143 = vector.broadcast %20 : vector<1x256xf32> to vector<8x256xf32>
    %144 = arith.mulf %142, %143 : vector<8x256xf32>
    %c6_102 = arith.constant 6 : index
    %c0_103 = arith.constant 0 : index
    %c0_104 = arith.constant 0 : index
    %145 = vector.load %arg6[%c6_102, %c0_103, %c0_104] : memref<9x8x8xf32, #tpu.memory_space<vmem>>, vector<1x8x8xf32>
    %146 = vector.shape_cast %145 : vector<1x8x8xf32> to vector<8x8xf32>
    %cst_105 = arith.constant dense<0.000000e+00> : vector<8x256xf32>
    %147 = tpu.matmul %146, %144, %cst_105 {dimension_numbers = #tpu.dot_dimension_numbers<[1], [0], [0], [1], [0, 0, 1, 1], [], []>} : vector<8x8xf32>, vector<8x256xf32>, vector<8x256xf32> -> vector<8x256xf32>
    %148 = arith.addf %141, %147 : vector<8x256xf32>
    %c0_106 = arith.constant 0 : index
    %c144_107 = arith.constant 144 : index
    %149 = vector.load %arg13[%c0_106, %c144_107] : memref<8x512xf32, #tpu.memory_space<vmem>>, vector<8x256xf32>
    %c7_108 = arith.constant 7 : index
    %c0_109 = arith.constant 0 : index
    %c0_110 = arith.constant 0 : index
    %150 = vector.load %arg6[%c7_108, %c0_109, %c0_110] : memref<9x8x8xf32, #tpu.memory_space<vmem>>, vector<1x8x8xf32>
    %151 = vector.shape_cast %150 : vector<1x8x8xf32> to vector<8x8xf32>
    %cst_111 = arith.constant dense<0.000000e+00> : vector<8x256xf32>
    %152 = tpu.matmul %151, %149, %cst_111 {dimension_numbers = #tpu.dot_dimension_numbers<[1], [0], [0], [1], [0, 0, 1, 1], [], []>} : vector<8x8xf32>, vector<8x256xf32>, vector<8x256xf32> -> vector<8x256xf32>
    %153 = arith.addf %148, %152 : vector<8x256xf32>
    %c0_112 = arith.constant 0 : index
    %c145_113 = arith.constant 145 : index
    %154 = vector.load %arg13[%c0_112, %c145_113] : memref<8x512xf32, #tpu.memory_space<vmem>>, vector<8x256xf32>
    %155 = vector.broadcast %24 : vector<1x256xf32> to vector<8x256xf32>
    %156 = arith.mulf %154, %155 : vector<8x256xf32>
    %c8_114 = arith.constant 8 : index
    %c0_115 = arith.constant 0 : index
    %c0_116 = arith.constant 0 : index
    %157 = vector.load %arg6[%c8_114, %c0_115, %c0_116] : memref<9x8x8xf32, #tpu.memory_space<vmem>>, vector<1x8x8xf32>
    %158 = vector.shape_cast %157 : vector<1x8x8xf32> to vector<8x8xf32>
    %cst_117 = arith.constant dense<0.000000e+00> : vector<8x256xf32>
    %159 = tpu.matmul %158, %156, %cst_117 {dimension_numbers = #tpu.dot_dimension_numbers<[1], [0], [0], [1], [0, 0, 1, 1], [], []>} : vector<8x8xf32>, vector<8x256xf32>, vector<8x256xf32> -> vector<8x256xf32>
    %160 = arith.addf %153, %159 : vector<8x256xf32>
    %c0_118 = arith.constant 0 : index
    %c0_119 = arith.constant 0 : index
    %161 = vector.load %arg9[%c0_118, %c0_119] : memref<8x1xf32, #tpu.memory_space<vmem>>, vector<8x1xf32>
    %162 = vector.broadcast %161 : vector<8x1xf32> to vector<8x256xf32>
    %163 = arith.addf %160, %162 : vector<8x256xf32>
    %cst_120 = arith.constant 0.00999999977 : f32
    %164 = vector.broadcast %cst_120 : f32 to vector<8x256xf32>
    %165 = arith.mulf %164, %163 : vector<8x256xf32>
    %166 = arith.maximumf %163, %165 : vector<8x256xf32>
    %c0_121 = arith.constant 0 : index
    %c0_122 = arith.constant 0 : index
    %c0_123 = arith.constant 0 : index
    %167 = vector.load %arg4[%c0_121, %c0_122, %c0_123] : memref<1x8x1xf32, #tpu.memory_space<vmem>>, vector<1x8x1xf32>
    %168 = vector.shape_cast %167 : vector<1x8x1xf32> to vector<8x1xf32>
    %169 = vector.broadcast %168 : vector<8x1xf32> to vector<8x256xf32>
    %170 = arith.mulf %166, %169 : vector<8x256xf32>
    %c0_124 = arith.constant 0 : index
    %c128_125 = arith.constant 128 : index
    %171 = vector.load %arg13[%c0_124, %c128_125] : memref<8x512xf32, #tpu.memory_space<vmem>>, vector<8x256xf32>
    tpu.vector_store %arg13[%c0_124, %c128_125], %170 {strides = array<i32>} : memref<8x512xf32, #tpu.memory_space<vmem>>, vector<8x256xf32>,
    %c0_126 = arith.constant 0 : index
    %c128_127 = arith.constant 128 : index
    %172 = vector.load %arg13[%c0_126, %c128_127] : memref<8x512xf32, #tpu.memory_space<vmem>>, vector<8x256xf32>
    %c4_128 = arith.constant 4 : index
    %c0_129 = arith.constant 0 : index
    %c0_130 = arith.constant 0 : index
    %173 = vector.load %arg7[%c4_128, %c0_129, %c0_130] : memref<9x8x8xf32, #tpu.memory_space<vmem>>, vector<1x8x8xf32>
    %174 = vector.shape_cast %173 : vector<1x8x8xf32> to vector<8x8xf32>
    %cst_131 = arith.constant dense<0.000000e+00> : vector<8x256xf32>
    %175 = tpu.matmul %174, %172, %cst_131 {dimension_numbers = #tpu.dot_dimension_numbers<[1], [0], [0], [1], [0, 0, 1, 1], [], []>} : vector<8x8xf32>, vector<8x256xf32>, vector<8x256xf32> -> vector<8x256xf32>
    %c0_132 = arith.constant 0 : index
    %c111_133 = arith.constant 111 : index
    %176 = vector.load %arg13[%c0_132, %c111_133] : memref<8x512xf32, #tpu.memory_space<vmem>>, vector<8x256xf32>
    %177 = vector.broadcast %20 : vector<1x256xf32> to vector<8x256xf32>
    %178 = arith.mulf %176, %177 : vector<8x256xf32>
    %c0_134 = arith.constant 0 : index
    %c0_135 = arith.constant 0 : index
    %c0_136 = arith.constant 0 : index
    %179 = vector.load %arg7[%c0_134, %c0_135, %c0_136] : memref<9x8x8xf32, #tpu.memory_space<vmem>>, vector<1x8x8xf32>
    %180 = vector.shape_cast %179 : vector<1x8x8xf32> to vector<8x8xf32>
    %cst_137 = arith.constant dense<0.000000e+00> : vector<8x256xf32>
    %181 = tpu.matmul %180, %178, %cst_137 {dimension_numbers = #tpu.dot_dimension_numbers<[1], [0], [0], [1], [0, 0, 1, 1], [], []>} : vector<8x8xf32>, vector<8x256xf32>, vector<8x256xf32> -> vector<8x256xf32>
    %182 = arith.addf %175, %181 : vector<8x256xf32>
    %c0_138 = arith.constant 0 : index
    %c112_139 = arith.constant 112 : index
    %183 = vector.load %arg13[%c0_138, %c112_139] : memref<8x512xf32, #tpu.memory_space<vmem>>, vector<8x256xf32>
    %c1_140 = arith.constant 1 : index
    %c0_141 = arith.constant 0 : index
    %c0_142 = arith.constant 0 : index
    %184 = vector.load %arg7[%c1_140, %c0_141, %c0_142] : memref<9x8x8xf32, #tpu.memory_space<vmem>>, vector<1x8x8xf32>
    %185 = vector.shape_cast %184 : vector<1x8x8xf32> to vector<8x8xf32>
    %cst_143 = arith.constant dense<0.000000e+00> : vector<8x256xf32>
    %186 = tpu.matmul %185, %183, %cst_143 {dimension_numbers = #tpu.dot_dimension_numbers<[1], [0], [0], [1], [0, 0, 1, 1], [], []>} : vector<8x8xf32>, vector<8x256xf32>, vector<8x256xf32> -> vector<8x256xf32>
    %187 = arith.addf %182, %186 : vector<8x256xf32>
    %c0_144 = arith.constant 0 : index
    %c113_145 = arith.constant 113 : index
    %188 = vector.load %arg13[%c0_144, %c113_145] : memref<8x512xf32, #tpu.memory_space<vmem>>, vector<8x256xf32>
    %189 = vector.broadcast %24 : vector<1x256xf32> to vector<8x256xf32>
    %190 = arith.mulf %188, %189 : vector<8x256xf32>
    %c2_146 = arith.constant 2 : index
    %c0_147 = arith.constant 0 : index
    %c0_148 = arith.constant 0 : index
    %191 = vector.load %arg7[%c2_146, %c0_147, %c0_148] : memref<9x8x8xf32, #tpu.memory_space<vmem>>, vector<1x8x8xf32>
    %192 = vector.shape_cast %191 : vector<1x8x8xf32> to vector<8x8xf32>
    %cst_149 = arith.constant dense<0.000000e+00> : vector<8x256xf32>
    %193 = tpu.matmul %192, %190, %cst_149 {dimension_numbers = #tpu.dot_dimension_numbers<[1], [0], [0], [1], [0, 0, 1, 1], [], []>} : vector<8x8xf32>, vector<8x256xf32>, vector<8x256xf32> -> vector<8x256xf32>
    %194 = arith.addf %187, %193 : vector<8x256xf32>
    %c0_150 = arith.constant 0 : index
    %c127_151 = arith.constant 127 : index
    %195 = vector.load %arg13[%c0_150, %c127_151] : memref<8x512xf32, #tpu.memory_space<vmem>>, vector<8x256xf32>
    %196 = vector.broadcast %20 : vector<1x256xf32> to vector<8x256xf32>
    %197 = arith.mulf %195, %196 : vector<8x256xf32>
    %c3_152 = arith.constant 3 : index
    %c0_153 = arith.constant 0 : index
    %c0_154 = arith.constant 0 : index
    %198 = vector.load %arg7[%c3_152, %c0_153, %c0_154] : memref<9x8x8xf32, #tpu.memory_space<vmem>>, vector<1x8x8xf32>
    %199 = vector.shape_cast %198 : vector<1x8x8xf32> to vector<8x8xf32>
    %cst_155 = arith.constant dense<0.000000e+00> : vector<8x256xf32>
    %200 = tpu.matmul %199, %197, %cst_155 {dimension_numbers = #tpu.dot_dimension_numbers<[1], [0], [0], [1], [0, 0, 1, 1], [], []>} : vector<8x8xf32>, vector<8x256xf32>, vector<8x256xf32> -> vector<8x256xf32>
    %201 = arith.addf %194, %200 : vector<8x256xf32>
    %c0_156 = arith.constant 0 : index
    %c129_157 = arith.constant 129 : index
    %202 = vector.load %arg13[%c0_156, %c129_157] : memref<8x512xf32, #tpu.memory_space<vmem>>, vector<8x256xf32>
    %203 = vector.broadcast %24 : vector<1x256xf32> to vector<8x256xf32>
    %204 = arith.mulf %202, %203 : vector<8x256xf32>
    %c5_158 = arith.constant 5 : index
    %c0_159 = arith.constant 0 : index
    %c0_160 = arith.constant 0 : index
    %205 = vector.load %arg7[%c5_158, %c0_159, %c0_160] : memref<9x8x8xf32, #tpu.memory_space<vmem>>, vector<1x8x8xf32>
    %206 = vector.shape_cast %205 : vector<1x8x8xf32> to vector<8x8xf32>
    %cst_161 = arith.constant dense<0.000000e+00> : vector<8x256xf32>
    %207 = tpu.matmul %206, %204, %cst_161 {dimension_numbers = #tpu.dot_dimension_numbers<[1], [0], [0], [1], [0, 0, 1, 1], [], []>} : vector<8x8xf32>, vector<8x256xf32>, vector<8x256xf32> -> vector<8x256xf32>
    %208 = arith.addf %201, %207 : vector<8x256xf32>
    %c0_162 = arith.constant 0 : index
    %c143_163 = arith.constant 143 : index
    %209 = vector.load %arg13[%c0_162, %c143_163] : memref<8x512xf32, #tpu.memory_space<vmem>>, vector<8x256xf32>
    %210 = vector.broadcast %20 : vector<1x256xf32> to vector<8x256xf32>
    %211 = arith.mulf %209, %210 : vector<8x256xf32>
    %c6_164 = arith.constant 6 : index
    %c0_165 = arith.constant 0 : index
    %c0_166 = arith.constant 0 : index
    %212 = vector.load %arg7[%c6_164, %c0_165, %c0_166] : memref<9x8x8xf32, #tpu.memory_space<vmem>>, vector<1x8x8xf32>
    %213 = vector.shape_cast %212 : vector<1x8x8xf32> to vector<8x8xf32>
    %cst_167 = arith.constant dense<0.000000e+00> : vector<8x256xf32>
    %214 = tpu.matmul %213, %211, %cst_167 {dimension_numbers = #tpu.dot_dimension_numbers<[1], [0], [0], [1], [0, 0, 1, 1], [], []>} : vector<8x8xf32>, vector<8x256xf32>, vector<8x256xf32> -> vector<8x256xf32>
    %215 = arith.addf %208, %214 : vector<8x256xf32>
    %c0_168 = arith.constant 0 : index
    %c144_169 = arith.constant 144 : index
    %216 = vector.load %arg13[%c0_168, %c144_169] : memref<8x512xf32, #tpu.memory_space<vmem>>, vector<8x256xf32>
    %c7_170 = arith.constant 7 : index
    %c0_171 = arith.constant 0 : index
    %c0_172 = arith.constant 0 : index
    %217 = vector.load %arg7[%c7_170, %c0_171, %c0_172] : memref<9x8x8xf32, #tpu.memory_space<vmem>>, vector<1x8x8xf32>
    %218 = vector.shape_cast %217 : vector<1x8x8xf32> to vector<8x8xf32>
    %cst_173 = arith.constant dense<0.000000e+00> : vector<8x256xf32>
    %219 = tpu.matmul %218, %216, %cst_173 {dimension_numbers = #tpu.dot_dimension_numbers<[1], [0], [0], [1], [0, 0, 1, 1], [], []>} : vector<8x8xf32>, vector<8x256xf32>, vector<8x256xf32> -> vector<8x256xf32>
    %220 = arith.addf %215, %219 : vector<8x256xf32>
    %c0_174 = arith.constant 0 : index
    %c145_175 = arith.constant 145 : index
    %221 = vector.load %arg13[%c0_174, %c145_175] : memref<8x512xf32, #tpu.memory_space<vmem>>, vector<8x256xf32>
    %222 = vector.broadcast %24 : vector<1x256xf32> to vector<8x256xf32>
    %223 = arith.mulf %221, %222 : vector<8x256xf32>
    %c8_176 = arith.constant 8 : index
    %c0_177 = arith.constant 0 : index
    %c0_178 = arith.constant 0 : index
    %224 = vector.load %arg7[%c8_176, %c0_177, %c0_178] : memref<9x8x8xf32, #tpu.memory_space<vmem>>, vector<1x8x8xf32>
    %225 = vector.shape_cast %224 : vector<1x8x8xf32> to vector<8x8xf32>
    %cst_179 = arith.constant dense<0.000000e+00> : vector<8x256xf32>
    %226 = tpu.matmul %225, %223, %cst_179 {dimension_numbers = #tpu.dot_dimension_numbers<[1], [0], [0], [1], [0, 0, 1, 1], [], []>} : vector<8x8xf32>, vector<8x256xf32>, vector<8x256xf32> -> vector<8x256xf32>
    %227 = arith.addf %220, %226 : vector<8x256xf32>
    %c0_180 = arith.constant 0 : index
    %c0_181 = arith.constant 0 : index
    %228 = vector.load %arg10[%c0_180, %c0_181] : memref<8x1xf32, #tpu.memory_space<vmem>>, vector<8x1xf32>
    %229 = vector.broadcast %228 : vector<8x1xf32> to vector<8x256xf32>
    %230 = arith.addf %227, %229 : vector<8x256xf32>
    %cst_182 = arith.constant 0.00999999977 : f32
    %231 = vector.broadcast %cst_182 : f32 to vector<8x256xf32>
    %232 = arith.mulf %231, %230 : vector<8x256xf32>
    %233 = arith.maximumf %230, %232 : vector<8x256xf32>
    %c0_183 = arith.constant 0 : index
    %c0_184 = arith.constant 0 : index
    %c0_185 = arith.constant 0 : index
    %234 = vector.load %arg11[%c0_183, %c0_184, %c0_185] : memref<1x8x256xf32, #tpu.memory_space<vmem>>, vector<1x8x256xf32>
    %235 = vector.shape_cast %234 : vector<1x8x256xf32> to vector<8x256xf32>
    %236 = vector.shape_cast %233 : vector<8x256xf32> to vector<1x8x256xf32>
    tpu.vector_store %arg11[%c0_183, %c0_184, %c0_185], %236 {strides = array<i32>} : memref<1x8x256xf32, #tpu.memory_space<vmem>>, vector<1x8x256xf32>,
    return
  }
  func.func @transform_0(%arg0: i32) -> (i32, i32, i32) {
    %c0_i32 = arith.constant 0 : i32
    %c0_i32_0 = arith.constant 0 : i32
    %c0_i32_1 = arith.constant 0 : i32
    return %arg0, %c0_i32, %c0_i32_0 : i32, i32, i32
  }
  func.func @transform_1(%arg0: i32) -> (i32, i32, i32) {
    %c0_i32 = arith.constant 0 : i32
    %c0_i32_0 = arith.constant 0 : i32
    %c0_i32_1 = arith.constant 0 : i32
    return %arg0, %c0_i32, %c0_i32_0 : i32, i32, i32
  }
  func.func @transform_2(%arg0: i32) -> (i32, i32, i32) {
    %c0_i32 = arith.constant 0 : i32
    %c0_i32_0 = arith.constant 0 : i32
    %c0_i32_1 = arith.constant 0 : i32
    return %arg0, %c0_i32, %c0_i32_0 : i32, i32, i32
  }
  func.func @transform_3(%arg0: i32) -> (i32, i32, i32) {
    %c0_i32 = arith.constant 0 : i32
    %c0_i32_0 = arith.constant 0 : i32
    %c0_i32_1 = arith.constant 0 : i32
    return %arg0, %c0_i32, %c0_i32_0 : i32, i32, i32
  }
  func.func @transform_4(%arg0: i32) -> (i32, i32, i32) {
    %c0_i32 = arith.constant 0 : i32
    %c0_i32_0 = arith.constant 0 : i32
    %c0_i32_1 = arith.constant 0 : i32
    %c0_i32_2 = arith.constant 0 : i32
    return %c0_i32, %c0_i32_0, %c0_i32_1 : i32, i32, i32
  }
  func.func @transform_5(%arg0: i32) -> (i32, i32, i32) {
    %c0_i32 = arith.constant 0 : i32
    %c0_i32_0 = arith.constant 0 : i32
    %c0_i32_1 = arith.constant 0 : i32
    %c0_i32_2 = arith.constant 0 : i32
    return %c0_i32, %c0_i32_0, %c0_i32_1 : i32, i32, i32
  }
  func.func @transform_6(%arg0: i32) -> (i32, i32, i32) {
    %c0_i32 = arith.constant 0 : i32
    %c0_i32_0 = arith.constant 0 : i32
    %c0_i32_1 = arith.constant 0 : i32
    %c0_i32_2 = arith.constant 0 : i32
    return %c0_i32, %c0_i32_0, %c0_i32_1 : i32, i32, i32
  }
  func.func @transform_7(%arg0: i32) -> (i32, i32) {
    %c0_i32 = arith.constant 0 : i32
    %c0_i32_0 = arith.constant 0 : i32
    %c0_i32_1 = arith.constant 0 : i32
    return %c0_i32, %c0_i32_0 : i32, i32
  }
  func.func @transform_8(%arg0: i32) -> (i32, i32) {
    %c0_i32 = arith.constant 0 : i32
    %c0_i32_0 = arith.constant 0 : i32
    %c0_i32_1 = arith.constant 0 : i32
    return %c0_i32, %c0_i32_0 : i32, i32
  }
  func.func @transform_9(%arg0: i32) -> (i32, i32) {
    %c0_i32 = arith.constant 0 : i32
    %c0_i32_0 = arith.constant 0 : i32
    %c0_i32_1 = arith.constant 0 : i32
    return %c0_i32, %c0_i32_0 : i32, i32
  }
  func.func @transform_10(%arg0: i32) -> (i32, i32, i32) {
    %c0_i32 = arith.constant 0 : i32
    %c0_i32_0 = arith.constant 0 : i32
    %c0_i32_1 = arith.constant 0 : i32
    return %arg0, %c0_i32, %c0_i32_0 : i32, i32, i32
  }
}

</mosaic_0001>

<bundles_post_ra>
// kernel: convolution_triplet_modulated.1
= control target key start
LH: loop header
LB: loop body
LE: loop exit
PB: predicated region body
PF: predicated region fallthrough
CT: control target
= control target key end

     0   :  { %15 = vsyncpa [#allocation5], 0  ;;  %s3556_s13 = smov 0   ;;  %s4075_s0 = inlined_call_operand.vmem [shape: f32[2,4,256], index: 0, kind: input, shape index: {}]   ;;  %s4076_s1 = inlined_call_operand.vmem [shape: f32[2,4,1], index: 1, kind: input, shape index: {}]   ;;  %s4077_s2 = inlined_call_operand.vmem [shape: f32[2,8,1], index: 2, kind: input, shape index: {}]   ;;  %s4078_s3 = inlined_call_operand.vmem [shape: f32[2,8,1], index: 3, kind: input, shape index: {}]   ;;  %s4079_s4 = inlined_call_operand.vmem [shape: f32[9,8,4], index: 4, kind: input, shape index: {}]   ;;  %s4080_s5 = inlined_call_operand.vmem [shape: f32[9,8,8], index: 5, kind: input, shape index: {}]   ;;  %s4081_s6 = inlined_call_operand.vmem [shape: f32[9,8,8], index: 6, kind: input, shape index: {}]   ;;  %s4082_s7 = inlined_call_operand.vmem [shape: f32[8,1], index: 7, kind: input, shape index: {}]   ;;  %s4083_s8 = inlined_call_operand.vmem [shape: f32[8,1], index: 8, kind: input, shape index: {}]   ;;  %s4084_s9 = inlined_call_operand.hbm [shape: f32[8,1], index: 9, kind: input, shape index: {}]   ;;  %s4085_s10 = inlined_call_operand.vmem [shape: f32[2,8,256], index: 10, kind: output, shape index: {}]  }
   0x1 LB: > { %s3562_s14 = sadd.s32 4294967295, %s3487_s13   ;;  %p3249_p0 = scmp.ge.s32.totalorder %s3487_s13, 1  ;;  %s3487_s13 = sphi %s3556_s13, %s21_s13  }
   0x2   : > { %p282_p1 = scmp.lt.s32.totalorder %s3487_s13, 3  ;;  %p4086_p3 = scmp.eq.s32.totalorder %s3562_s14, 0 }
   0x3   : > { %s3489_s16 = smov [#allocation4]   ;;  %s3449_s21 = scalar_lea.hbm %s4084_s9, 128 }
   0x4   : > { %p3566_p2 = pnand %p3249_p0, %p282_p1  ;;  %s310_s17 = sshll.u32 %s3489_s16, 4  ;;  %s311_s17 = int_to_ptr.vmem [resolvable:$true] %s310_s17 }
   0x5   : > { %p3450_p6 = scmp.ne.s32.totalorder %s4084_s9, %s3449_s21  ;;  %p3456_p10 = scmp.lt.u32.totalorder %s3449_s21, %s4084_s9 }
   0x6   : > { %s4088_s15 = scalar_select %p3566_p2, 1, 0 }
   0x7   : > { %p3390_p4 = pneg %p3566_p2 }
   0x9   : > { %p3575_p5 = pnand %p4086_p3, %p3390_p4 }
   0xb   : > { %p3451_p7 = pneg %p3575_p5 }
   0xd   : > { %p3452_p8 = pnand %p3451_p7, %p3450_p6 }
   0xf   : > { %p3453_p9 = pneg %p3452_p8 }
  0x11   : > { %p3458_p11 = pnand %p3456_p10, %p3453_p9 }
  0x13   : > { %3461 = shalt.err (!%p3458_p11)
}
  0x14   : > { %s3462_s26 = scalar_lea.vmem %s311_s17, 128  ;;  %p3470_p1 = scmp.lt.s32.totalorder %s311_s17, %s311_s17 }
  0x15   : > { %p3463_p12 = scmp.ne.s32.totalorder %s311_s17, %s3462_s26  ;;  %p3471_p4 = scmp.lt.s32.totalorder %s3462_s26, %s3462_s26 }
  0x17   : > { %p3465_p13 = pnand %p3463_p12, %p3451_p7  ;;  %p3472_p3 = por %p3471_p4, %p3470_p1 }
  0x19   : > { %p3466_p0 = pneg %p3465_p13 }
  0x1b   : > { %p3473_p2 = pnand %p3472_p3, %p3466_p0 }
  0x1d   : > { %3476 = shalt.err (!%p3473_p2)
}
  0x1e   : > { %3393 = dma.hbm_to_vmem [thread:$0]  (!%p3575_p5), %s4084_s9, 128, %s311_s17, [#allocation5]  }
  0x1f   : > { %p4090_p6 = scmp.ne.s32.totalorder %s4088_s15, 0 }
  0x20   : > { %p4091_p8 = scmp.eq.s32.totalorder (!%p4090_p6), %s3562_s14, 0 }
  0x21   : > { %352 = sbr.rel (%p4090_p6) target bundleno = 1447 (0x5a7), region = 60 }
  0x28   : > { %3482 = dma.done.wait (%p4091_p8), [#allocation5], 128   ;;  %p4092_p7 = pmov %p4091_p8 }
  0x29   : > { %p402_p9 = scmp.lt.s32.totalorder %s3562_s14, 1  ;;  %v424_v0 = vlaneseq  ;;  %v3490_v1 = vmov 0   ;;  %v3491_v2 = vmov 0.0   ;;  %s3492_s15 = smov 111   ;;  %v3498_v14 = vmov 839922192  }
  0x2a   : > { %3484 = vsyncadd (%p4092_p7), [#allocation5], 4294967168  ;;  %3416 = vset.pattern.permute.xlu0 %v3490_v1  ;;  %463 = vst [vmem:[#allocation2] sm:$0xf] %v3491_v2  ;;  %971 = vmatprep.mubr.f32.mxu0 %v3491_v2  ;;  %s3493_s16 = smov 127   ;;  %s3494_s17 = smov 1   ;;  %v472_v15 = vunpack.c.l.s4 %v3498_v14 }
  0x2b   : > { %464 = vst [vmem:[#allocation2 + $0xc] sm:$0xf] %v3491_v2  ;;  %s4094_s14 = smov (!%p402_p9, %s3562_s14), 1  ;;  %v425_v3 = vand.u32 127, %v424_v0  ;;  %584 = vmatprep.mubr.f32.mxu1 %v3491_v2  ;;  %3417 = vset.pattern.permute.xlu1 %v3490_v1  ;;  %s3495_s18 = smov 15   ;;  %v475_v17 = vshrl.u32 %v424_v0, 7 }
  0x2c   : > { %s3256_s29 = sshll.u32 %s4094_s14, 2  ;;  %s3496_s19 = smov 113   ;;  %v473_v16 = vunpack.c.0.s8 %v472_v15  ;;  %vm880_vm4 = vcmask 1039360   ;;  %vm492_vm5 = vcmask 908288   ;;  %vm792_vm6 = vcmask 121856  }
  0x2d   : > { %v426_v4 = vadd.s32 128, %v425_v3  ;;  %v431_v5 = vand.u32 15, %v425_v3  ;;  %s410_s12 = scalar_lea.vmem %s4076_s1, %s3256_s29  ;;  %s3497_s20 = smov 17   ;;  %vm897_vm7 = vcmask 7168   ;;  %vm775_vm8 = vcmask 924672  }
  0x2e   : > { %v466_v7 = vld [vmem:[%s410_s12] sm:$0xf]  ;;  %s3636_s21 = sshll.u32 %s4094_s14, 3  ;;  %v476_v18 = vsub.s32 %v473_v16, %v475_v17  ;;  %s3499_s25 = smov 16   ;;  %vm508_vm9 = vcmask 138240   ;;  %vm515_vm10 = vcmask 1043456  }
  0x2f   : > { %v438_v6 = vand.u32 15, %v426_v4  ;;  %vm451_vm0 = vcmp.ne.s32.totalorder %v431_v5, 0  ;;  %vm457_vm1 = vcmp.ne.s32.totalorder %v431_v5, 15  ;;  %469 = vperm.xlu0 %3416, %v466_v7   ;;  %s406_s24 = scalar_lea.vmem %s4075_s0, %s3636_s21  ;;  %s3500_s26 = smov 112   ;;  %vm511_vm11 = vcmask 31744  }
  0x30   : > { %v3614_v8 = vsel %vm451_vm0, 1.0, %v3491_v2  ;;  %v3620_v10 = vsel %vm457_vm1, 1.0, %v3491_v2  ;;  %v465_v20 = vld [vmem:[%s406_s24] sm:$0xff]  ;;  %s414_s29 = scalar_lea.vmem %s4077_s2, %s3636_s21  ;;  %vm684_vm12 = vcmask 130048   ;;  %vm1199_vm13 = vcmask 916480   ;;  %s418_s11 = scalar_lea.vmem %s4078_s3, %s3636_s21 }
  0x31   : > { %vm452_vm2 = vcmp.ne.s32.totalorder %v438_v6, 0  ;;  %vm458_vm3 = vcmp.ne.s32.totalorder %v438_v6, 15  ;;  %v1399_v7 = vld [vmem:[%s414_s29] sm:$0xff]  ;;  %vm1439_vm14 = vcmask 64512  }
  0x32   : > { %v3617_v9 = vsel %vm452_vm2, 1.0, %v3491_v2  ;;  %v3623_v11 = vsel %vm458_vm3, 1.0, %v3491_v2  ;;  %v981_v41 = vld [vmem:[#allocation2 + $0xc] sm:$0xf] }
  0x33   : > { %v488_v12 = vcombine.low %v3614_v8, %v3617_v9  ;;  %v771_v13 = vcombine.low %v3620_v10, %v3623_v11  ;;  %v1084_v49 = vld [vmem:[#allocation2 + $0xc] sm:$0xf]  ;;  %v3692_v14 = vpack.i.bf16 %v3623_v11, %v3620_v10 }
  0x34   : > { %v1187_v57 = vld [vmem:[#allocation2 + $0xc] sm:$0xf] }
  0x35   : > { %489 = vrot.lane.b32.xlu1 %v488_v12, %s3492_s15  ;;  %877 = vrot.lane.b32.xlu0 %v488_v12, %s3493_s16  ;;  %v1283_v4 = vld [vmem:[#allocation2 + $0xc] sm:$0xf] }
  0x39   : > { %982 = vrot.lane.b32.xlu1 %v771_v13, %s3494_s17  ;;  %1085 = vrot.lane.b32.xlu0 %v488_v12, %s3495_s18  ;;  %v1385_v12 = vld [vmem:[%s4082_s7] sm:$0xff] }
  0x3d   : > { %772 = vrot.lane.b32.xlu1 %v771_v13, %s3496_s19  ;;  %1284 = vrot.lane.b32.xlu0 %v771_v13, %s3497_s20  ;;  %v3418_v13 = vpack.i.bf16 %v3617_v9, %v3614_v8 }
  0xa7   : > { %v490_v25 = vpop.permute.xlu1 %489 }
  0xa8   : > { %v491_v26 = vrot.slane %v490_v25, 4 }
  0xaa   : > { %v493_v34 = vsel %vm492_vm5, %v491_v26, %v490_v25  ;;  %v498_v25 = vld [vmem:[%s4079_s4] sm:$0xff] }
  0xab   : > { %v983_v36 = vpop.permute.xlu1 %982 }
  0xac   : > { %v984_v39 = vrot.slane %v983_v36, 4 }
  0xae   : > { %v470_v19 = vpop.permute.xlu0 %469  ;;  %v985_v44 = vsel %vm897_vm7, %v984_v39, %v983_v36  ;;  %v989_v45 = vmul.f32 %v984_v39, %v981_v41 }
  0xaf   : > { %v477_v21 = vrot.slane %v470_v19, %v476_v18  ;;  %v773_v52 = vpop.permute.xlu1 %772  ;;  %v3280_v19 = vld [vmem:[%s4079_s4 + $0x18] sm:$0xff] }
  0xb0   : > { %v774_v55 = vrot.slane %v773_v52, 4 }
  0xb1   : > { %v3642_v22 = vmul.f32 %v477_v21, %v465_v20 }
  0xb2   : > { %v878_v23 = vpop.permute.xlu0 %877  ;;  %v776_v59 = vsel %vm775_vm8, %v774_v55, %v773_v52 }
  0xb3   : > { %480 = vst [vmem:[#allocation2 + $0x4] sm:$0xff] %v3642_v22  ;;  %v879_v24 = vrot.slane %v878_v23, 4  ;;  %v988_v46 = vmul.f32 %v985_v44, %v3642_v22  ;;  %v1192_v58 = vcombine.high %v3642_v22, %v3642_v22  ;;  %v3272_v44 = vld [vmem:[%s4079_s4 + $0x8] sm:$0xff] }
  0xb5   : > { %v881_v30 = vsel %vm880_vm4, %v879_v24, %v878_v23  ;;  %v994_v48 = vcombine.high %v988_v46, %v988_v46 }
  0xb6   : > { %v1086_v27 = vpop.permute.xlu0 %1085 }
  0xb7   : > { %v1087_v35 = vrot.slane %v1086_v27, 4 }
  0xb9   : > { %v1088_v40 = vsel %vm792_vm6, %v1087_v35, %v1086_v27  ;;  %v1092_v50 = vmul.f32 %v1087_v35, %v1084_v49 }
  0xba   : > { %v484_v28 = vld [vmem:[#allocation2] sm:$0xff]  ;;  %v876_v29 = vld [vmem:[#allocation2 + $0x8] sm:$0xf]  ;;  %v1091_v42 = vmul.f32 %v1088_v40, %v3642_v22  ;;  %v1285_v56 = vpop.permute.xlu0 %1284 }
  0xbb   : > { %v884_v31 = vmul.f32 %v881_v30, %v484_v28  ;;  %v885_v32 = vmul.f32 %v879_v24, %v876_v29  ;;  %v485_v33 = vld [vmem:[#allocation2 + $0x8] sm:$0xf]  ;;  %v496_v37 = vmul.f32 %v493_v34, %v484_v28  ;;  %v677_v53 = vcombine.high %v484_v28, %v484_v28 }
  0xbc   : > { %v497_v38 = vmul.f32 %v491_v26, %v485_v33  ;;  %v672_v51 = vld [vmem:[#allocation2 + $0x8] sm:$0xf]  ;;  %v1097_v54 = vcombine.high %v1091_v42, %v1091_v42  ;;  %v1286_v60 = vrot.slane %v1285_v56, 4  ;;  %v779_v61 = vmul.f32 %v776_v59, %v484_v28 }
  0xbd   : > { %895 = vrot.lane.b32.xlu0 %v885_v32, %s3494_s17  ;;  %891 = vrot.lane.b32.xlu1 %v884_v31, %s3494_s17  ;;  %v890_v43 = vcombine.high %v884_v31, %v884_v31  ;;  %v501_v47 = vcombine.high %v496_v37, %v496_v37  ;;  %v768_v62 = vld [vmem:[#allocation2 + $0x8] sm:$0xf] }
  0xbe   : > { %v1287_v63 = vsel %vm508_vm9, %v1286_v60, %v1285_v56  ;;  %v780_v0 = vmul.f32 %v774_v55, %v768_v62  ;;  %v785_v3 = vcombine.high %v779_v61, %v779_v61  ;;  %v1291_v5 = vmul.f32 %v1286_v60, %v1283_v4  ;;  %v3284_v30 = vld [vmem:[%s4079_s4 + $0x28] sm:$0xff]  ;;  %v3276_v56 = vld [vmem:[%s4079_s4 + $0x10] sm:$0xff] }
  0xbf   : > { %v1290_v1 = vmul.f32 %v1287_v63, %v3642_v22 }
  0xc1   : > { %506 = vrot.lane.b32.xlu1 %v497_v38, %s3497_s20  ;;  %502 = vrot.lane.b32.xlu0 %v496_v37, %s3497_s20  ;;  %v1296_v6 = vcombine.high %v1290_v1, %v1290_v1  ;;  %v3288_v38 = vld [vmem:[%s4079_s4 + $0x30] sm:$0xff] }
  0xc5   : > { %893 = vrot.lane.b32.xlu1 %v890_v43, %s3494_s17  ;;  %1098 = vrot.lane.b32.xlu0 %v1091_v42, %s3496_s19 }
  0xc9   : > { %999 = vrot.lane.b32.xlu1 %v989_v45, %s3493_s16  ;;  %504 = vrot.lane.b32.xlu0 %v501_v47, %s3497_s20  ;;  %v3292_v47 = vld [vmem:[%s4079_s4 + $0x38] sm:$0xff] }
  0xcd   : > { %995 = vrot.lane.b32.xlu1 %v988_v46, %s3493_s16  ;;  %997 = vrot.lane.b32.xlu0 %v994_v48, %s3493_s16 }
  0xd1   : > { %1102 = vrot.lane.b32.xlu1 %v1092_v50, %s3496_s19  ;;  %682 = vrot.lane.b32.xlu0 %v672_v51, %s3499_s25 }
  0xd5   : > { %680 = vrot.lane.b32.xlu1 %v677_v53, %s3499_s25  ;;  %1100 = vrot.lane.b32.xlu0 %v1097_v54, %s3496_s19 }
  0xd9   : > { %1195 = vrot.lane.b32.xlu1 %v1192_v58, %s3500_s26  ;;  %1197 = vrot.lane.b32.xlu0 %v1187_v57, %s3500_s26  ;;  %v3296_v57 = vld [vmem:[%s4079_s4 + $0x40] sm:$0xff] }
  0xdd   : > { %678 = vrot.lane.b32.xlu1 %v484_v28, %s3499_s25  ;;  %1193 = vrot.lane.b32.xlu0 %v3642_v22, %s3500_s26 }
  0xe1   : > { %788 = vrot.lane.b32.xlu1 %v785_v3, %s3495_s18  ;;  %790 = vrot.lane.b32.xlu0 %v780_v0, %s3495_s18 }
  0xe5   : > { %1299 = vrot.lane.b32.xlu1 %v1296_v6, %s3492_s15  ;;  %1301 = vrot.lane.b32.xlu0 %v1291_v5, %s3492_s15 }
  0xe9   : > { %786 = vrot.lane.b32.xlu1 %v779_v61, %s3495_s18  ;;  %1297 = vrot.lane.b32.xlu0 %v1290_v1, %s3492_s15 }
  0xed   : > { %1402 = vperm.xlu0 %3416, %v1399_v7   ;;  %1388 = vperm.xlu1 %3417, %v1385_v12  }
  0xf1   : > { %3419 = vrot.lane.b32.xlu1 %v3418_v13, %s3492_s15  ;;  %3424 = vrot.lane.b32.xlu0 %v3692_v14, %s3496_s19 }
  0xf5   : > { %3429 = vrot.lane.b32.xlu1 %v3418_v13, %s3493_s16  ;;  %3434 = vrot.lane.b32.xlu0 %v3692_v14, %s3494_s17 }
  0xf9   : > { %3439 = vrot.lane.b32.xlu1 %v3418_v13, %s3495_s18 }
 0x12f   : > { %v896_v15 = vpop.permute.xlu0 %895  ;;  %v892_v16 = vpop.permute.xlu1 %891 }
 0x133   : > { %v507_v17 = vpop.permute.xlu1 %506  ;;  %v503_v8 = vpop.permute.xlu0 %502 }
 0x137   : > { %v894_v9 = vpop.permute.xlu1 %893  ;;  %v1099_v10 = vpop.permute.xlu0 %1098 }
 0x138   : > { %v899_v11 = vsel %vm897_vm7, %v894_v9, %v896_v15  ;;  %v898_v18 = vsel %vm897_vm7, %v892_v16, %v894_v9 }
 0x139   : > { %3281 = vmatprep.subr.msk.mxu0 %vm515_vm10, %v899_v11 }
 0x13a   : > { %3282 = vmatpush1.msk.msra.mxu0 %vm515_vm10, %v898_v18 }
 0x13b   : > { %v1000_v20 = vpop.permute.xlu1 %999  ;;  %v505_v21 = vpop.permute.xlu0 %504  ;;  %3283 = vmatmul.mubr.msk.f32.vlgmr.msra.gmra.mrb[0].mxu0 %vm511_vm11, %v3280_v19 }
 0x13c   : > { %v510_v23 = vsel %vm508_vm9, %v505_v21, %v507_v17  ;;  %v509_v24 = vsel %vm508_vm9, %v503_v8, %v505_v21  ;;  %1074 = vmatprep.mubr.f32.mxu0 %v3491_v2 }
 0x13d   : > { %3266 = vmatprep.subr.msk.mxu1 %vm515_vm10, %v510_v23 }
 0x13e   : > { %3267 = vmatpush1.msk.msra.mxu1 %vm515_vm10, %v509_v24 }
 0x13f   : > { %v996_v26 = vpop.permute.xlu1 %995  ;;  %3269 = vmatprep.subr.msk.mxu1 %vm515_vm10, %v1192_v58  ;;  %v998_v27 = vpop.permute.xlu0 %997  ;;  %3268 = vmatmul.mubr.msk.f32.vlgmr.msra.gmra.mrb[0].mxu1 %vm511_vm11, %v498_v25 }
 0x140   : > { %v1001_v28 = vsel %vm880_vm4, %v996_v26, %v998_v27  ;;  %v1002_v29 = vsel %vm880_vm4, %v998_v27, %v1000_v20  ;;  %3270 = vmatpush1.msk.msra.mxu1 %vm515_vm10, %v3642_v22  ;;  %664 = vmatprep.mubr.f32.mxu1 %v3491_v2  ;;  %v3265_v22 = vld [vmem:[%s4079_s4 + $0x20] sm:$0xff] }
 0x141   : > { %3285 = vmatprep.subr.msk.mxu0 %vm515_vm10, %v1002_v29 }
 0x142   : > { %3286 = vmatpush1.msk.msra.mxu0 %vm515_vm10, %v1001_v28 }
 0x143   : > { %v1103_v31 = vpop.permute.xlu1 %1102  ;;  %v683_v32 = vpop.permute.xlu0 %682  ;;  %3287 = vmatmul.mubr.msk.f32.vlgmr.msra.gmra.mrb[0].mxu0 %vm511_vm11, %v3284_v30 }
 0x144   : > { %1177 = vmatprep.mubr.f32.mxu0 %v3491_v2 }
 0x147   : > { %v681_v33 = vpop.permute.xlu1 %680  ;;  %v1101_v34 = vpop.permute.xlu0 %1100  ;;  %3271 = vmatmul.mubr.msk.f32.vlgmr.msra.gmra.mrb[0].mxu1 %vm511_vm11, %v3265_v22 }
 0x148   : > { %v686_v35 = vsel %vm684_vm12, %v681_v33, %v683_v32  ;;  %v1104_v36 = vsel %vm775_vm8, %v1099_v10, %v1101_v34  ;;  %v1105_v37 = vsel %vm775_vm8, %v1101_v34, %v1103_v31  ;;  %758 = vmatprep.mubr.f32.mxu1 %v3491_v2 }
 0x149   : > { %3273 = vmatprep.subr.msk.mxu1 %vm515_vm10, %v686_v35  ;;  %3289 = vmatprep.subr.msk.mxu0 %vm515_vm10, %v1105_v37 }
 0x14a   : > { %3290 = vmatpush1.msk.msra.mxu0 %vm515_vm10, %v1104_v36 }
 0x14b   : > { %v1196_v39 = vpop.permute.xlu1 %1195  ;;  %v1198_v40 = vpop.permute.xlu0 %1197  ;;  %3291 = vmatmul.mubr.msk.f32.vlgmr.msra.gmra.mrb[0].mxu0 %vm511_vm11, %v3288_v38 }
 0x14c   : > { %v1201_v41 = vsel %vm1199_vm13, %v1196_v39, %v1198_v40  ;;  %1273 = vmatprep.mubr.f32.mxu0 %v3491_v2 }
 0x14d   : > { %3293 = vmatprep.subr.msk.mxu0 %vm515_vm10, %v1201_v41 }
 0x14f   : > { %v679_v42 = vpop.permute.xlu1 %678  ;;  %v1194_v43 = vpop.permute.xlu0 %1193 }
 0x150   : > { %v685_v45 = vsel %vm684_vm12, %v679_v42, %v681_v33  ;;  %v1200_v46 = vsel %vm1199_vm13, %v1194_v43, %v1196_v39 }
 0x151   : > { %3274 = vmatpush1.msk.msra.mxu1 %vm515_vm10, %v685_v45  ;;  %3294 = vmatpush1.msk.msra.mxu0 %vm515_vm10, %v1200_v46 }
 0x152   : > { %3275 = vmatmul.mubr.msk.f32.vlgmr.msra.gmra.mrb[0].mxu1 %vm511_vm11, %v3272_v44 }
 0x153   : > { %v789_v48 = vpop.permute.xlu1 %788  ;;  %v791_v49 = vpop.permute.xlu0 %790  ;;  %3295 = vmatmul.mubr.msk.f32.vlgmr.msra.gmra.mrb[0].mxu0 %vm511_vm11, %v3292_v47  ;;  %866 = vmatprep.mubr.f32.mxu1 %v3491_v2 }
 0x154   : > { %v794_v50 = vsel %vm792_vm6, %v789_v48, %v791_v49  ;;  %1376 = vmatprep.mubr.f32.mxu0 %v3491_v2 }
 0x155   : > { %3277 = vmatprep.subr.msk.mxu1 %vm515_vm10, %v794_v50 }
 0x157   : > { %v1300_v51 = vpop.permute.xlu1 %1299  ;;  %v1302_v52 = vpop.permute.xlu0 %1301 }
 0x158   : > { %v1304_v53 = vsel %vm492_vm5, %v1300_v51, %v1302_v52  ;;  %v1425_v52 = vld [vmem:[%s4080_s5] sm:$0xff] }
 0x159   : > { %3297 = vmatprep.subr.msk.mxu0 %vm515_vm10, %v1304_v53 }
 0x15b   : > { %v787_v54 = vpop.permute.xlu1 %786  ;;  %v1298_v55 = vpop.permute.xlu0 %1297 }
 0x15c   : > { %v793_v58 = vsel %vm792_vm6, %v787_v54, %v789_v48  ;;  %v1303_v59 = vsel %vm492_vm5, %v1298_v55, %v1300_v51 }
 0x15d   : > { %3278 = vmatpush1.msk.msra.mxu1 %vm515_vm10, %v793_v58  ;;  %3298 = vmatpush1.msk.msra.mxu0 %vm515_vm10, %v1303_v59 }
 0x15e   : > { %3279 = vmatmul.mubr.msk.f32.vlgmr.msra.gmra.mrb[0].mxu1 %vm511_vm11, %v3276_v56  ;;  %3299 = vmatmul.mubr.msk.f32.vlgmr.msra.gmra.mrb[0].mxu0 %vm511_vm11, %v3296_v57 }
 0x15f   : > { %1507 = vmatprep.mubr.f32.mxu1 %v3491_v2  ;;  %2394 = vmatprep.mubr.f32.mxu0 %v3491_v2 }
 0x16c   : > { %v1389_v60 = vpop.permute.xlu1 %1388  ;;  %v1403_v17 = vpop.permute.xlu0 %1402 }
 0x170   : > { %v3420_v4 = vpop.permute.xlu1 %3419  ;;  %v3425_v21 = vpop.permute.xlu0 %3424 }
 0x171   : > { %v3781_v6 = vunpack.i.h.bf16 %v3420_v4  ;;  %v3421_v7 = vunpack.i.l.bf16 %v3420_v4  ;;  %v3799_v23 = vunpack.i.h.bf16 %v3425_v21  ;;  %v3426_v24 = vunpack.i.l.bf16 %v3425_v21 }
 0x173   : > { %v3785_v9 = vsel %vm492_vm5, %v3421_v7, %v3781_v6  ;;  %v3797_v20 = vmul.f32 0.0, %v3421_v7  ;;  %v3809_v25 = vsel %vm775_vm8, %v3426_v24, %v3799_v23 }
 0x174   : > { %v3430_v26 = vpop.permute.xlu1 %3429  ;;  %v3435_v30 = vpop.permute.xlu0 %3434 }
 0x175   : > { %v3813_v27 = vunpack.i.h.bf16 %v3430_v26  ;;  %v3431_v28 = vunpack.i.l.bf16 %v3430_v26  ;;  %v3437_v22 = vunpack.i.h.bf16 %v3435_v30  ;;  %v3828_v33 = vunpack.i.l.bf16 %v3435_v30 }
 0x177   : > { %v3826_v32 = vsel %vm880_vm4, %v3431_v28, %v3813_v27  ;;  %v3837_v36 = vmul.f32 0.0, %v3431_v28  ;;  %v3842_v38 = vsel %vm897_vm7, %v3828_v33, %v3437_v22  ;;  %v3849_v42 = vmul.f32 0.0, %v3437_v22 }
 0x178   : > { %v3440_v37 = vpop.permute.xlu1 %3439 }
 0x179   : > { %v3442_v39 = vunpack.i.h.bf16 %v3440_v37  ;;  %v3845_v40 = vunpack.i.l.bf16 %v3440_v37 }
 0x17b   : > { %v3858_v44 = vsel %vm792_vm6, %v3845_v40, %v3442_v39  ;;  %v3862_v45 = vmul.f32 0.0, %v3442_v39  ;;  %v3309_v39 = vld [vmem:[%s4080_s5 + $0x28] sm:$0xff] }
 0x231   : > { %v868_v61 = vpop.f32.mrb[0].mxu1  ;;  %v1378_v62 = vpop.f32.mrb[0].mxu0 }
 0x232   : > { %v3338_v63 = vadd.f32 %v1378_v62, %v868_v61  ;;  %v870_v0 = vpop.f32.mrb[1].mxu1  ;;  %v1380_v1 = vpop.f32.mrb[1].mxu0 }
 0x233   : > { %v3339_v3 = vadd.f32 %v1380_v1, %v870_v0  ;;  %v3300_v1 = vld [vmem:[%s4080_s5 + $0x20] sm:$0xff] }
 0x234   : > { %v1391_v5 = vadd.f32 %v3338_v63, %v1389_v60  ;;  %v2283_v63 = vld [vmem:[%s4083_s8] sm:$0xff] }
 0x235   : > { %v1392_v12 = vadd.f32 %v3339_v3, %v1389_v60 }
 0x236   : > { %v1393_v13 = vmul.f32 0.01, %v1391_v5 }
 0x237   : > { %v1394_v15 = vmul.f32 0.01, %v1392_v12 }
 0x238   : > { %v1395_v16 = vmax.f32 %v1391_v5, %v1393_v13 }
 0x239   : > { %v1396_v8 = vmax.f32 %v1392_v12, %v1394_v15  ;;  %v2295_v12 = vld [vmem:[%s418_s11] sm:$0xff] }
 0x23a   : > { %v3787_v10 = vmul.f32 %v1403_v17, %v1395_v16 }
 0x23b   : > { %v3789_v11 = vmul.f32 %v1403_v17, %v1396_v8  ;;  %v3303_v17 = vld [vmem:[%s4080_s5 + $0x8] sm:$0xff] }
 0x23c   : > { %v1423_v18 = vmul.f32 %v3785_v9, %v3787_v10  ;;  %v1688_v29 = vmul.f32 %v3809_v25, %v3787_v10  ;;  %v1790_v34 = vmul.f32 %v3826_v32, %v3787_v10  ;;  %v1894_v43 = vmul.f32 %v3828_v33, %v3787_v10 }
 0x23d   : > { %v1424_v19 = vmul.f32 %v3781_v6, %v3789_v11  ;;  %v1689_v31 = vmul.f32 %v3799_v23, %v3789_v11  ;;  %v1791_v35 = vmul.f32 %v3813_v27, %v3789_v11  ;;  %v1895_v41 = vmul.f32 %v3842_v38, %v3789_v11 }
 0x23e   : > { %1431 = vrot.lane.b32.xlu0 %v1423_v18, %s3497_s20  ;;  %v1997_v46 = vmul.f32 %v3858_v44, %v3789_v11  ;;  %v1996_v47 = vmul.f32 %v3845_v40, %v3787_v10 }
 0x23f   : > { %1433 = vrot.lane.b32.xlu1 %v1424_v19, %s3497_s20 }
 0x242   : > { %1429 = vrot.lane.b32.xlu0 %v3797_v20, %s3497_s20 }
 0x243   : > { %3444 = vrot.lane.b32.xlu1 %v3692_v14, %s3497_s20  ;;  %v3819_v14 = vmul.f32 0.0, %v3426_v24  ;;  %v3305_v24 = vld [vmem:[%s4080_s5 + $0x10] sm:$0xff] }
 0x246   : > { %1595 = vrot.lane.b32.xlu0 %v3787_v10, %s3499_s25 }
 0x247   : > { %1597 = vrot.lane.b32.xlu1 %v3789_v11, %s3499_s25 }
 0x24a   : > { %1593 = vrot.lane.b32.xlu0 %v3491_v2, %s3499_s25 }
 0x24b   : > { %1697 = vrot.lane.b32.xlu1 %v1688_v29, %s3495_s18 }
 0x24e   : > { %1699 = vrot.lane.b32.xlu0 %v1689_v31, %s3495_s18  ;;  %v3307_v31 = vld [vmem:[%s4080_s5 + $0x18] sm:$0xff] }
 0x24f   : > { %1695 = vrot.lane.b32.xlu1 %v3819_v14, %s3495_s18 }
 0x252   : > { %1799 = vrot.lane.b32.xlu0 %v1790_v34, %s3494_s17 }
 0x253   : > { %1801 = vrot.lane.b32.xlu1 %v1791_v35, %s3494_s17 }
 0x256   : > { %1797 = vrot.lane.b32.xlu0 %v3837_v36, %s3494_s17 }
 0x257   : > { %1904 = vrot.lane.b32.xlu1 %v1895_v41, %s3493_s16 }
 0x25a   : > { %1906 = vrot.lane.b32.xlu0 %v3849_v42, %s3493_s16 }
 0x25b   : > { %1902 = vrot.lane.b32.xlu1 %v1894_v43, %s3493_s16 }
 0x25e   : > { %2006 = vrot.lane.b32.xlu0 %v1997_v46, %s3496_s19 }
 0x25f   : > { %2008 = vrot.lane.b32.xlu1 %v3862_v45, %s3496_s19 }
 0x262   : > { %2004 = vrot.lane.b32.xlu0 %v1996_v47, %s3496_s19 }
 0x263   : > { %2097 = vrot.lane.b32.xlu1 %v3789_v11, %s3500_s26 }
 0x266   : > { %2099 = vrot.lane.b32.xlu0 %v3491_v2, %s3500_s26 }
 0x267   : > { %2095 = vrot.lane.b32.xlu1 %v3787_v10, %s3500_s26 }
 0x2b0   : > { %v1432_v48 = vpop.permute.xlu0 %1431 }
 0x2b1   : > { %v1434_v49 = vpop.permute.xlu1 %1433 }
 0x2b2   : > { %v1436_v50 = vsel %vm508_vm9, %v1432_v48, %v1434_v49  ;;  %v3311_v49 = vld [vmem:[%s4080_s5 + $0x30] sm:$0xff] }
 0x2b3   : > { %1443 = vmatprep.subr.mxu1 %v1436_v50 }
 0x2b4   : > { %v1430_v51 = vpop.permute.xlu0 %1429 }
 0x2b5   : > { %v1435_v53 = vsel %vm508_vm9, %v1430_v51, %v1432_v48  ;;  %v3445_v54 = vpop.permute.xlu1 %3444  ;;  %v3313_v51 = vld [vmem:[%s4080_s5 + $0x38] sm:$0xff] }
 0x2b6   : > { %v3447_v55 = vunpack.i.h.bf16 %v3445_v54  ;;  %v3884_v56 = vunpack.i.l.bf16 %v3445_v54  ;;  %1444 = vmatpush1.msra.mxu1 %v1435_v53 }
 0x2b7   : > { %3301 = vmatmul.mubr.msk.f32.vlgmr.msra.gmra.mrb[2].mxu1 %vm1439_vm14, %v1425_v52  ;;  %1517 = vmatprep.subr.mxu1 %v3789_v11 }
 0x2b8   : > { %v3888_v57 = vmul.f32 0.0, %v3447_v55  ;;  %1518 = vmatpush1.msra.mxu1 %v3787_v10  ;;  %v1596_v58 = vpop.permute.xlu0 %1595  ;;  %v3893_v59 = vsel %vm508_vm9, %v3884_v56, %v3447_v55  ;;  %1581 = vmatprep.mubr.f32.mxu1 %v3491_v2  ;;  %v2189_v5 = vmul.f32 %v3884_v56, %v3787_v10 }
 0x2b9   : > { %v1598_v60 = vpop.permute.xlu1 %1597  ;;  %v2190_v61 = vmul.f32 %v3893_v59, %v3789_v11 }
 0x2ba   : > { %2201 = vrot.lane.b32.xlu1 %v3888_v57, %s3492_s15  ;;  %v1600_v62 = vsel %vm684_vm12, %v1596_v58, %v1598_v60 }
 0x2bb   : > { %1606 = vmatprep.subr.mxu1 %v1600_v62  ;;  %2199 = vrot.lane.b32.xlu0 %v2190_v61, %s3492_s15 }
 0x2bc   : > { %v1594_v0 = vpop.permute.xlu0 %1593 }
 0x2bd   : > { %v1599_v3 = vsel %vm684_vm12, %v1594_v0, %v1596_v58  ;;  %v1698_v4 = vpop.permute.xlu1 %1697  ;;  %v3315_v58 = vld [vmem:[%s4080_s5 + $0x40] sm:$0xff] }
 0x2be   : > { %2286 = vperm.xlu1 %3417, %v2283_v63  }
 0x2bf   : > { %3302 = vmatmul.mubr.msk.f32.vlgmr.msra.gmra.mrb[2].mxu1 %vm1439_vm14, %v3300_v1  ;;  %2197 = vrot.lane.b32.xlu0 %v2189_v5, %s3492_s15 }
 0x2c0   : > { %1607 = vmatpush1.msra.mxu1 %v1599_v3  ;;  %v1700_v7 = vpop.permute.xlu0 %1699  ;;  %1670 = vmatprep.mubr.f32.mxu1 %v3491_v2 }
 0x2c1   : > { %v1696_v13 = vpop.permute.xlu1 %1695  ;;  %v1702_v15 = vsel %vm792_vm6, %v1698_v4, %v1700_v7 }
 0x2c2   : > { %1708 = vmatprep.subr.mxu1 %v1702_v15  ;;  %v1701_v11 = vsel %vm792_vm6, %v1696_v13, %v1698_v4 }
 0x2c3   : > { %2298 = vperm.xlu0 %3416, %v2295_v12  }
 0x2c4   : > { %v1800_v16 = vpop.permute.xlu0 %1799 }
 0x2c5   : > { %v1802_v8 = vpop.permute.xlu1 %1801 }
 0x2c6   : > { %v1804_v10 = vsel %vm897_vm7, %v1800_v16, %v1802_v8 }
 0x2c7   : > { %3304 = vmatmul.mubr.msk.f32.vlgmr.msra.gmra.mrb[2].mxu1 %vm1439_vm14, %v3303_v17 }
 0x2c8   : > { %1709 = vmatpush1.msra.mxu1 %v1701_v11  ;;  %v1798_v18 = vpop.permute.xlu0 %1797  ;;  %1772 = vmatprep.mubr.f32.mxu1 %v3491_v2 }
 0x2c9   : > { %1810 = vmatprep.subr.mxu1 %v1804_v10  ;;  %v1905_v19 = vpop.permute.xlu1 %1904  ;;  %v1803_v26 = vsel %vm897_vm7, %v1798_v18, %v1800_v16 }
 0x2cc   : > { %v1907_v21 = vpop.permute.xlu0 %1906 }
 0x2cd   : > { %v1903_v28 = vpop.permute.xlu1 %1902  ;;  %v1909_v29 = vsel %vm880_vm4, %v1905_v19, %v1907_v21 }
 0x2ce   : > { %v1908_v34 = vsel %vm880_vm4, %v1903_v28, %v1905_v19  ;;  %v3317_v19 = vld [vmem:[%s4081_s6 + $0x20] sm:$0xff] }
 0x2cf   : > { %3306 = vmatmul.mubr.msk.f32.vlgmr.msra.gmra.mrb[2].mxu1 %vm1439_vm14, %v3305_v24 }
 0x2d0   : > { %1811 = vmatpush1.msra.mxu1 %v1803_v26  ;;  %1874 = vmatprep.mubr.f32.mxu1 %v3491_v2  ;;  %v2007_v30 = vpop.permute.xlu0 %2006 }
 0x2d1   : > { %1915 = vmatprep.subr.mxu1 %v1909_v29  ;;  %v2009_v22 = vpop.permute.xlu1 %2008 }
 0x2d2   : > { %v2011_v37 = vsel %vm775_vm8, %v2007_v30, %v2009_v22 }
 0x2d4   : > { %v2005_v35 = vpop.permute.xlu0 %2004 }
 0x2d5   : > { %v2098_v43 = vpop.permute.xlu1 %2097  ;;  %v2010_v46 = vsel %vm775_vm8, %v2005_v35, %v2007_v30 }
 0x2d7   : > { %3308 = vmatmul.mubr.msk.f32.vlgmr.msra.gmra.mrb[2].mxu1 %vm1439_vm14, %v3307_v31  ;;  %v3320_v31 = vld [vmem:[%s4081_s6 + $0x8] sm:$0xff] }
 0x2d8   : > { %1916 = vmatpush1.msra.mxu1 %v1908_v34  ;;  %1979 = vmatprep.mubr.f32.mxu1 %v3491_v2  ;;  %v2100_v41 = vpop.permute.xlu0 %2099 }
 0x2d9   : > { %2017 = vmatprep.subr.mxu1 %v2011_v37  ;;  %v2102_v47 = vsel %vm1199_vm13, %v2098_v43, %v2100_v41  ;;  %v2096_v48 = vpop.permute.xlu1 %2095  ;;  %v3322_v41 = vld [vmem:[%s4081_s6 + $0x10] sm:$0xff] }
 0x2da   : > { %v2101_v50 = vsel %vm1199_vm13, %v2096_v48, %v2098_v43 }
 0x2df   : > { %3310 = vmatmul.mubr.msk.f32.vlgmr.msra.gmra.mrb[2].mxu1 %vm1439_vm14, %v3309_v39 }
 0x2e0   : > { %2018 = vmatpush1.msra.mxu1 %v2010_v46  ;;  %2081 = vmatprep.mubr.f32.mxu1 %v3491_v2 }
 0x2e1   : > { %2108 = vmatprep.subr.mxu1 %v2102_v47 }
 0x2e7   : > { %3312 = vmatmul.mubr.msk.f32.vlgmr.msra.gmra.mrb[2].mxu1 %vm1439_vm14, %v3311_v49 }
 0x2e8   : > { %2109 = vmatpush1.msra.mxu1 %v2101_v50  ;;  %2172 = vmatprep.mubr.f32.mxu1 %v3491_v2  ;;  %v3324_v50 = vld [vmem:[%s4081_s6 + $0x18] sm:$0xff] }
 0x2ef   : > { %3314 = vmatmul.mubr.msk.f32.vlgmr.msra.gmra.mrb[2].mxu1 %vm1439_vm14, %v3313_v51 }
 0x2f0   : > { %2274 = vmatprep.mubr.f32.mxu1 %v3491_v2 }
 0x32c   : > { %v2202_v52 = vpop.permute.xlu1 %2201 }
 0x32d   : > { %v2200_v53 = vpop.permute.xlu0 %2199 }
 0x32e   : > { %v2204_v54 = vsel %vm492_vm5, %v2200_v53, %v2202_v52 }
 0x32f   : > { %2210 = vmatprep.subr.mxu1 %v2204_v54 }
 0x331   : > { %v2198_v55 = vpop.permute.xlu0 %2197 }
 0x332   : > { %v2203_v60 = vsel %vm492_vm5, %v2198_v55, %v2200_v53  ;;  %v3326_v55 = vld [vmem:[%s4081_s6 + $0x28] sm:$0xff] }
 0x333   : > { %2211 = vmatpush1.msra.mxu1 %v2203_v60 }
 0x334   : > { %3316 = vmatmul.mubr.msk.f32.vlgmr.msra.gmra.mrb[2].mxu1 %vm1439_vm14, %v3315_v58 }
 0x33d   : > { %v2287_v61 = vpop.permute.xlu1 %2286 }
 0x342   : > { %v2299_v7 = vpop.permute.xlu0 %2298 }
 0x407   : > { %v2276_v62 = vpop.f32.mrb[2].mxu1 }
 0x408   : > { %v2289_v63 = vadd.f32 %v2287_v61, %v2276_v62  ;;  %v2278_v0 = vpop.f32.mrb[3].mxu1 }
 0x409   : > { %v2290_v1 = vadd.f32 %v2287_v61, %v2278_v0 }
 0x40a   : > { %v2291_v3 = vmul.f32 0.01, %v2289_v63 }
 0x40b   : > { %v2292_v4 = vmul.f32 0.01, %v2290_v1 }
 0x40c   : > { %v2293_v5 = vmax.f32 %v2289_v63, %v2291_v3  ;;  %v3328_v63 = vld [vmem:[%s4081_s6 + $0x30] sm:$0xff] }
 0x40d   : > { %v2294_v12 = vmax.f32 %v2290_v1, %v2292_v4 }
 0x40e   : > { %v2301_v13 = vmul.f32 %v2299_v7, %v2293_v5 }
 0x40f   : > { %v2302_v15 = vmul.f32 %v2299_v7, %v2294_v12  ;;  %v3330_v7 = vld [vmem:[%s4081_s6 + $0x38] sm:$0xff] }
 0x410   : > { %v2311_v16 = vmul.f32 %v2301_v13, %v3785_v9  ;;  %v2567_v8 = vmul.f32 %v2301_v13, %v3809_v25  ;;  %v2757_v25 = vmul.f32 %v3828_v33, %v2301_v13  ;;  %v3036_v33 = vmul.f32 %v3884_v56, %v2301_v13 }
 0x411   : > { %v2312_v17 = vmul.f32 %v3781_v6, %v2302_v15  ;;  %v2568_v9 = vmul.f32 %v3799_v23, %v2302_v15  ;;  %v2661_v6 = vmul.f32 %v2301_v13, %v3826_v32  ;;  %v2758_v23 = vmul.f32 %v2302_v15, %v3842_v38 }
 0x412   : > { %2319 = vrot.lane.b32.xlu1 %v2311_v16, %s3497_s20  ;;  %v3037_v32 = vmul.f32 %v2302_v15, %v3893_v59 }
 0x413   : > { %2321 = vrot.lane.b32.xlu0 %v2312_v17, %s3497_s20 }
 0x416   : > { %2317 = vrot.lane.b32.xlu1 %v3797_v20, %s3497_s20  ;;  %v2662_v20 = vmul.f32 %v3813_v27, %v2302_v15  ;;  %v2851_v27 = vmul.f32 %v3845_v40, %v2301_v13 }
 0x417   : > { %2482 = vrot.lane.b32.xlu0 %v2301_v13, %s3499_s25 }
 0x41a   : > { %2484 = vrot.lane.b32.xlu1 %v2302_v15, %s3499_s25 }
 0x41b   : > { %2480 = vrot.lane.b32.xlu0 %v3491_v2, %s3499_s25 }
 0x41e   : > { %2576 = vrot.lane.b32.xlu1 %v2567_v8, %s3495_s18 }
 0x41f   : > { %2578 = vrot.lane.b32.xlu0 %v2568_v9, %s3495_s18 }
 0x422   : > { %2574 = vrot.lane.b32.xlu1 %v3819_v14, %s3495_s18  ;;  %v2852_v14 = vmul.f32 %v2302_v15, %v3858_v44 }
 0x423   : > { %2670 = vrot.lane.b32.xlu0 %v2661_v6, %s3494_s17 }
 0x426   : > { %2672 = vrot.lane.b32.xlu1 %v2662_v20, %s3494_s17 }
 0x427   : > { %2668 = vrot.lane.b32.xlu0 %v3837_v36, %s3494_s17  ;;  %v3130_v36 = vld [vmem:[#allocation4] sm:$0xff] }
 0x42a   : > { %2767 = vrot.lane.b32.xlu1 %v2758_v23, %s3493_s16 }
 0x42b   : > { %2769 = vrot.lane.b32.xlu0 %v3849_v42, %s3493_s16 }
 0x42e   : > { %2765 = vrot.lane.b32.xlu1 %v2757_v25, %s3493_s16  ;;  %s3337_s16 = sshll.u32 %s4094_s14, 4 }
 0x42f   : > { %2861 = vrot.lane.b32.xlu0 %v2852_v14, %s3496_s19  ;;  %s423_s18 = scalar_lea.vmem %s4085_s10, %s3337_s16 }
 0x432   : > { %2863 = vrot.lane.b32.xlu1 %v3862_v45, %s3496_s19  ;;  %v2313_v45 = vld [vmem:[%s4081_s6] sm:$0xff] }
 0x433   : > { %2859 = vrot.lane.b32.xlu0 %v2851_v27, %s3496_s19 }
 0x436   : > { %2952 = vrot.lane.b32.xlu1 %v2302_v15, %s3500_s26 }
 0x437   : > { %2954 = vrot.lane.b32.xlu0 %v3491_v2, %s3500_s26 }
 0x43a   : > { %2950 = vrot.lane.b32.xlu1 %v2301_v13, %s3500_s26 }
 0x43b   : > { %3046 = vrot.lane.b32.xlu0 %v3037_v32, %s3492_s15 }
 0x43e   : > { %3048 = vrot.lane.b32.xlu1 %v3888_v57, %s3492_s15 }
 0x43f   : > { %3044 = vrot.lane.b32.xlu0 %v3036_v33, %s3492_s15 }
 0x442   : > { %3133 = vperm.xlu1 %3417, %v3130_v36  }
 0x484   : > { %v2320_v38 = vpop.permute.xlu1 %2319 }
 0x485   : > { %v2322_v40 = vpop.permute.xlu0 %2321 }
 0x486   : > { %v2324_v42 = vsel %vm508_vm9, %v2320_v38, %v2322_v40 }
 0x487   : > { %2330 = vmatprep.subr.mxu0 %v2324_v42 }
 0x488   : > { %v2318_v44 = vpop.permute.xlu1 %2317 }
 0x489   : > { %v2323_v59 = vsel %vm508_vm9, %v2318_v44, %v2320_v38  ;;  %v2483_v56 = vpop.permute.xlu0 %2482 }
 0x48a   : > { %2331 = vmatpush1.msra.mxu0 %v2323_v59 }
 0x48b   : > { %3318 = vmatmul.mubr.msk.f32.vlgmr.msra.gmra.mrb[2].mxu0 %vm1439_vm14, %v2313_v45  ;;  %2404 = vmatprep.subr.mxu0 %v2302_v15 }
 0x48c   : > { %2405 = vmatpush1.msra.mxu0 %v2301_v13  ;;  %v2485_v57 = vpop.permute.xlu1 %2484  ;;  %2468 = vmatprep.mubr.f32.mxu0 %v3491_v2  ;;  %v3332_v13 = vld [vmem:[%s4081_s6 + $0x40] sm:$0xff] }
 0x48d   : > { %v2481_v10 = vpop.permute.xlu0 %2480  ;;  %v2487_v11 = vsel %vm684_vm12, %v2483_v56, %v2485_v57 }
 0x48e   : > { %2493 = vmatprep.subr.mxu0 %v2487_v11  ;;  %v2486_v26 = vsel %vm684_vm12, %v2481_v10, %v2483_v56 }
 0x490   : > { %v2577_v18 = vpop.permute.xlu1 %2576 }
 0x491   : > { %v2579_v21 = vpop.permute.xlu0 %2578 }
 0x492   : > { %v2581_v24 = vsel %vm792_vm6, %v2577_v18, %v2579_v21 }
 0x493   : > { %3319 = vmatmul.mubr.msk.f32.vlgmr.msra.gmra.mrb[2].mxu0 %vm1439_vm14, %v3317_v19 }
 0x494   : > { %2494 = vmatpush1.msra.mxu0 %v2486_v26  ;;  %v2575_v28 = vpop.permute.xlu1 %2574  ;;  %2557 = vmatprep.mubr.f32.mxu0 %v3491_v2 }
 0x495   : > { %2587 = vmatprep.subr.mxu0 %v2581_v24  ;;  %v2671_v29 = vpop.permute.xlu0 %2670  ;;  %v2580_v34 = vsel %vm792_vm6, %v2575_v28, %v2577_v18 }
 0x498   : > { %v2673_v30 = vpop.permute.xlu1 %2672 }
 0x499   : > { %v2669_v22 = vpop.permute.xlu0 %2668  ;;  %v2675_v35 = vsel %vm897_vm7, %v2671_v29, %v2673_v30 }
 0x49a   : > { %v2674_v46 = vsel %vm897_vm7, %v2669_v22, %v2671_v29 }
 0x49b   : > { %3321 = vmatmul.mubr.msk.f32.vlgmr.msra.gmra.mrb[2].mxu0 %vm1439_vm14, %v3320_v31 }
 0x49c   : > { %2588 = vmatpush1.msra.mxu0 %v2580_v34  ;;  %v2768_v37 = vpop.permute.xlu1 %2767  ;;  %2651 = vmatprep.mubr.f32.mxu0 %v3491_v2 }
 0x49d   : > { %2681 = vmatprep.subr.mxu0 %v2675_v35  ;;  %v2770_v39 = vpop.permute.xlu0 %2769 }
 0x49e   : > { %v2772_v47 = vsel %vm880_vm4, %v2768_v37, %v2770_v39 }
 0x4a0   : > { %v2766_v43 = vpop.permute.xlu1 %2765 }
 0x4a1   : > { %v2862_v48 = vpop.permute.xlu0 %2861  ;;  %v2771_v51 = vsel %vm880_vm4, %v2766_v43, %v2768_v37 }
 0x4a3   : > { %3323 = vmatmul.mubr.msk.f32.vlgmr.msra.gmra.mrb[2].mxu0 %vm1439_vm14, %v3322_v41 }
 0x4a4   : > { %2682 = vmatpush1.msra.mxu0 %v2674_v46  ;;  %2745 = vmatprep.mubr.f32.mxu0 %v3491_v2  ;;  %v2864_v49 = vpop.permute.xlu1 %2863 }
 0x4a5   : > { %2778 = vmatprep.subr.mxu0 %v2772_v47  ;;  %v2860_v52 = vpop.permute.xlu0 %2859  ;;  %v2866_v53 = vsel %vm775_vm8, %v2862_v48, %v2864_v49 }
 0x4a6   : > { %v2865_v60 = vsel %vm775_vm8, %v2860_v52, %v2862_v48 }
 0x4a8   : > { %v2953_v54 = vpop.permute.xlu1 %2952 }
 0x4a9   : > { %v2955_v58 = vpop.permute.xlu0 %2954 }
 0x4aa   : > { %v2957_v62 = vsel %vm1199_vm13, %v2953_v54, %v2955_v58 }
 0x4ab   : > { %3325 = vmatmul.mubr.msk.f32.vlgmr.msra.gmra.mrb[2].mxu0 %vm1439_vm14, %v3324_v50 }
 0x4ac   : > { %2779 = vmatpush1.msra.mxu0 %v2771_v51  ;;  %2842 = vmatprep.mubr.f32.mxu0 %v3491_v2  ;;  %v2951_v61 = vpop.permute.xlu1 %2950 }
 0x4ad   : > { %2872 = vmatprep.subr.mxu0 %v2866_v53  ;;  %v3047_v1 = vpop.permute.xlu0 %3046  ;;  %v2956_v3 = vsel %vm1199_vm13, %v2951_v61, %v2953_v54 }
 0x4b0   : > { %v3049_v0 = vpop.permute.xlu1 %3048 }
 0x4b1   : > { %v3051_v4 = vsel %vm492_vm5, %v3047_v1, %v3049_v0  ;;  %v3045_v5 = vpop.permute.xlu0 %3044 }
 0x4b2   : > { %v3050_v12 = vsel %vm492_vm5, %v3045_v5, %v3047_v1 }
 0x4b3   : > { %3327 = vmatmul.mubr.msk.f32.vlgmr.msra.gmra.mrb[2].mxu0 %vm1439_vm14, %v3326_v55 }
 0x4b4   : > { %2873 = vmatpush1.msra.mxu0 %v2865_v60  ;;  %2936 = vmatprep.mubr.f32.mxu0 %v3491_v2 }
 0x4b5   : > { %2963 = vmatprep.subr.mxu0 %v2957_v62 }
 0x4bb   : > { %3329 = vmatmul.mubr.msk.f32.vlgmr.msra.gmra.mrb[2].mxu0 %vm1439_vm14, %v3328_v63 }
 0x4bc   : > { %2964 = vmatpush1.msra.mxu0 %v2956_v3  ;;  %3027 = vmatprep.mubr.f32.mxu0 %v3491_v2 }
 0x4bd   : > { %3057 = vmatprep.subr.mxu0 %v3051_v4 }
 0x4c1   : > { %v3134_v15 = vpop.permute.xlu1 %3133 }
 0x4c3   : > { %3331 = vmatmul.mubr.msk.f32.vlgmr.msra.gmra.mrb[2].mxu0 %vm1439_vm14, %v3330_v7 }
 0x4c4   : > { %3058 = vmatpush1.msra.mxu0 %v3050_v12  ;;  %3121 = vmatprep.mubr.f32.mxu0 %v3491_v2 }
 0x4cb   : > { %3333 = vmatmul.mubr.msk.f32.vlgmr.msra.gmra.mrb[2].mxu0 %vm1439_vm14, %v3332_v13 }
 0x59e   : > { %v3123_v16 = vpop.f32.mrb[2].mxu0 }
 0x59f   : > { %v3136_v17 = vadd.f32 %v3134_v15, %v3123_v16  ;;  %v3125_v8 = vpop.f32.mrb[3].mxu0 }
 0x5a0   : > { %v3137_v9 = vadd.f32 %v3134_v15, %v3125_v8 }
 0x5a1   : > { %v3138_v6 = vmul.f32 0.01, %v3136_v17 }
 0x5a2   : > { %v3139_v20 = vmul.f32 0.01, %v3137_v9 }
 0x5a3   : > { %v3140_v23 = vmax.f32 %v3136_v17, %v3138_v6 }
 0x5a4   : > { %v3141_v2 = vmax.f32 %v3137_v9, %v3139_v20 }
 0x5a5   : > { %3142 = vst [vmem:[%s423_s18] sm:$0xff] %v3140_v23 }
 0x5a6   : > { %3143 = vst [vmem:[%s423_s18 + $0x8] sm:$0xff] %v3141_v2 }
 0x5a7 PF: > { %s21_s13 = sadd.s32 1, %s3487_s13  }
 0x5a8   : > { %p18_p2 = scmp.ge.s32.totalorder %s21_s13, 4  }
 0x5aa   :  { %20 = sbr.rel (!%p18_p2) target bundleno = 1 (0x1), region = 128 }
 0x5b1   :  { %3165 = vsyncpa [#allocation5], 1 }
 0x5b2   :  { %3167 = vsyncpa [#allocation5 + $0x1], 1 }

</bundles_post_ra>
